<compile_context>
chip_gen: v7x
topology: tpu7x:2x2x1
jax: 0.10.0
libtpu: 0.0.40
codegen_flags: <defaults>
</compile_context>

<pallas_src>
import numpy as np
import jax
import jax.numpy as jnp
from jax import lax
from jax.experimental import pallas as pl
from jax.experimental.pallas import tpu as pltpu


# ----------------------------------------------------------------------------
# Fused kernel: StructInduction + Gauss-Jordan inverse + GraphConvLayer
# ----------------------------------------------------------------------------
def _make_fused_kernel(*, n, hidden, ds, hd, layers, bp, offs):
    sem = hidden // 2
    soff = sem // 2
    half = hidden // 2

    def kernel(x_ref, w_ref, out_ref):
        def getw(name):
            off, r, c = offs[name]          # static offsets -> free ref slices
            return w_ref[off:off + r, 0:c]

        x2d = x_ref[...].astype(jnp.float32)                     # (bp*n, H)

        # ----- str_v built in-kernel from two static lane slices -----------
        strv = jnp.concatenate([x2d[:, soff:half],
                                x2d[:, half + soff:hidden]], axis=1)  # (bp*n, ds)

        # ----------------------- StructInduction ---------------------------
        w_tptc = getw("wtptc")                                   # (ds, 2ds)
        b_tptc = getw("btptc")                                   # (1, 2ds)
        wfi = getw("wfi")                                        # (1, ds)
        wb = getw("wb")                                          # (ds, ds)

        # tp / tc fused into a single matmul against [wtp^T | wtc^T]
        tptc = jnp.tanh(jnp.dot(strv, w_tptc,
                                preferred_element_type=jnp.float32) + b_tptc)
        tp = tptc[:, :ds]
        tc = tptc[:, ds:2 * ds]

        # Reference expands BOTH tp and tc along dim 2, so the bilinear score
        # is constant over j:  f_ij[i, j] = tp[i] @ Wb @ tc[i]
        fvec = jnp.sum(jnp.dot(tp, wb, preferred_element_type=jnp.float32) * tc,
                       axis=1, keepdims=True)                    # (bp*n, 1)
        e_all = jnp.exp(fvec)                                    # (bp*n, 1)
        f_all = jnp.exp(jnp.sum(strv * wfi, axis=1, keepdims=True))

        i_idx = lax.broadcasted_iota(jnp.int32, (n, n), 0)
        j_idx = lax.broadcasted_iota(jnp.int32, (n, n), 1)
        diag_m = i_idx == j_idx
        off_diag = i_idx != j_idx
        row0 = i_idx == 0
        irow_pos = i_idx > 0
        jcol_pos = j_idx > 0
        eye_f = jnp.where(diag_m, 1.0, 0.0)

        def col_to_row(v):                                       # (n,1) -> (1,n)
            # TODO(synk): a direct small-shape transpose would save ~2 vreg
            # ops per call; kept on the select+reduce path for robust lowering.
            return jnp.sum(jnp.where(diag_m, jnp.broadcast_to(v, (n, n)), 0.0),
                           axis=0, keepdims=True)

        adj_list, denom_list = [], []
        for s in range(bp):                                      # per sample
            r0 = s * n
            e_col = e_all[r0:r0 + n, :]                          # (n, 1)
            f_col = f_all[r0:r0 + n, :]
            e_row = col_to_row(e_col)                            # (1, n)
            f_row = col_to_row(f_col)

            # Laplacian with analytic column sums (A never materialized):
            #   A[i,j] = e[i]*(i!=j),  colsum[j] = S - e[j]
            s_tot = jnp.sum(e_col, axis=0, keepdims=True)        # (1, 1)
            colsum = s_tot - e_col                               # (n, 1)
            lap = jnp.where(diag_m, jnp.broadcast_to(colsum, (n, n)),
                            jnp.broadcast_to(-e_col, (n, n)))
            lbar = jnp.where(row0, jnp.broadcast_to(f_row, (n, n)), lap)

            # ---- unrolled Gauss-Jordan inverse, static-slice extraction ----
            # TODO(synk): no partial pivoting — relies on the positive-weight
            # matrix-tree Laplacian being well conditioned (same regime torch
            # operates in here).
            m = lbar
            inv = eye_f
            for k in range(n):
                prow_m = m[k:k + 1, :]                           # pivot row
                prow_i = inv[k:k + 1, :]
                r = 1.0 / prow_m[:, k:k + 1]                     # exact pivot recip
                prow_m = prow_m * r
                prow_i = prow_i * r
                col = m[:, k:k + 1]                              # elimination col
                rowk = i_idx == k
                m = jnp.where(rowk, prow_m, m - col * prow_m)
                inv = jnp.where(rowk, prow_i, inv - col * prow_i)
            linv = inv                                           # L_bar^{-1}

            # diag(Linv) via masked lane reduce
            diag_col = jnp.sum(jnp.where(diag_m, linv, 0.0),
                               axis=1, keepdims=True)            # (n, 1)

            # adj = dx^T built directly in transposed orientation:
            #   adj[p,q] = e[q]*(p!=q) * ((p!=0)*Linv[p,p] - (q!=0)*Linv[p,q])
            at = jnp.where(off_diag, jnp.broadcast_to(e_row, (n, n)), 0.0)
            adj = (jnp.where(irow_pos, at * diag_col, 0.0)
                   - jnp.where(jcol_pos, at * linv, 0.0))
            adj_list.append(adj)
            denom_list.append(jnp.sum(adj, axis=1, keepdims=True) + 1.0)

        denom = denom_list[0] if bp == 1 else jnp.concatenate(denom_list, axis=0)
        inv_denom = pl.reciprocal(denom, approx=True)            # (bp*n, 1), EUP

        # --------------- GraphConvLayer (self_loop=True, eval) -------------
        def adj_mm(g):      # block-diagonal per-sample adj @ g  (g: (bp*n, w))
            parts = [jnp.dot(adj_list[s], g[s * n:(s + 1) * n, :],
                             preferred_element_type=jnp.float32)
                     for s in range(bp)]
            return parts[0] if bp == 1 else jnp.concatenate(parts, axis=0)

        feats = x2d                                              # dense concat
        afeats = adj_mm(x2d)                                     # adj @ concat
        outs = []
        for l in range(layers):
            wlt = getw(f"w{l}t")                                 # (H + l*hd, hd)
            bl = getw(f"b{l}")                                   # (1, hd)
            # self-loop folded: one fused matmul per layer
            axw = jnp.dot(afeats + feats, wlt,
                          preferred_element_type=jnp.float32) + 2.0 * bl
            g = jnp.maximum(axw * inv_denom, 0.0)                # dropout = id
            outs.append(g)
            if l + 1 < layers:
                feats = jnp.concatenate([feats, g], axis=1)
                afeats = jnp.concatenate([afeats, adj_mm(g)], axis=1)

        gcn_out = (outs[0] if layers == 1
                   else jnp.concatenate(outs, axis=1)) + x2d     # (bp*n, H)
        out = jnp.dot(gcn_out, getw("wot"),
                      preferred_element_type=jnp.float32) + getw("bo")
        # TODO(synk): H < 128 -> lane-partial stores; negligible at this size.
        out_ref[...] = out.astype(out_ref.dtype)

    return kernel


# ----------------------------------------------------------------------------
# Wrapper helpers
# ----------------------------------------------------------------------------
def _pack_weights(params, gcn_layer):
    """Pack every constant operand into one (rows, max_cols) f32 buffer with
    8-aligned row offsets; returns (packed, {name: (row_off, rows, cols)})."""
    entries = [
        ("wtptc", jnp.concatenate([params["wtp"].T, params["wtc"].T], axis=1)),
        ("btptc", jnp.concatenate([params["btp"], params["btc"]], axis=1)),
        ("wfi", params["wfi"]),
        ("wb", params["wb"]),
    ]
    for l in range(gcn_layer):
        entries.append((f"w{l}t", params["gcn_w"][l].T))
        entries.append((f"b{l}", params["gcn_b"][l]))
    entries += [("wot", params["wo"].T), ("bo", params["bo"])]

    max_c = max(int(a.shape[1]) for _, a in entries)
    offs, blocks, row = {}, [], 0
    for name, a in entries:
        a = np.asarray(a, np.float32)
        r, c = a.shape
        rp = -(-r // 8) * 8                       # 8-align each block
        blk = np.zeros((rp, max_c), np.float32)
        blk[:r, :c] = a
        blocks.append(blk)
        offs[name] = (row, r, c)
        row += rp
    packed = jnp.asarray(np.concatenate(blocks, axis=0))
    return packed, offs


def _num_grid_steps(batch):
    # Grid is a serial loop on single-TC chips (v5e/v6e): collapse to 1 step.
    # v7x has 2 TensorCores per chip: keep a 2-way "parallel" axis.
    try:
        kind = jax.devices()[0].device_kind.lower()
    except Exception:
        kind = ""
    cores = 2 if ("v7" in kind or "7x" in kind) else 1
    steps = min(batch, cores)
    while steps > 1 and batch % steps:
        steps -= 1
    return max(steps, 1)


def dynamic_reasoner_forward(x, params, gcn_layer):
    B, N, H = x.shape
    ds = H - H // 2
    hd = H // gcn_layer
    packed, offs = _pack_weights(params, gcn_layer)

    steps = _num_grid_steps(B)
    bp = B // steps                                # batch items per grid step
    x2d = x.reshape(B * N, H)                      # free reshape: fold batch

    kernel = _make_fused_kernel(n=N, hidden=H, ds=ds, hd=hd,
                                layers=gcn_layer, bp=bp, offs=offs)

    out2d = pl.pallas_call(
        kernel,
        out_shape=jax.ShapeDtypeStruct((B * N, H), x.dtype),
        grid_spec=pltpu.PrefetchScalarGridSpec(
            num_scalar_prefetch=0,
            grid=(steps,),
            in_specs=[pl.BlockSpec((bp * N, H), lambda s: (s, 0)),
                      pl.BlockSpec(packed.shape, lambda s: (0, 0))],
            out_specs=pl.BlockSpec((bp * N, H), lambda s: (s, 0))),
        compiler_params=pltpu.CompilerParams(
            dimension_semantics=("parallel",)),
    )(x2d, packed)
    return out2d.reshape(B, N, H)


# ----------------------------------------------------------------------------
# Pure-JAX reference (same math, jnp.linalg.inv) for sanity checking
# ----------------------------------------------------------------------------
def reference_forward(x, params, gcn_layer):
    B, N, H = x.shape
    sem = H // 2
    x4 = x.reshape(B, N, 2, H // 2)
    str_v = jnp.concatenate([x4[:, :, 0, sem // 2:],
                             x4[:, :, 1, sem // 2:]], axis=2)
    tp = jnp.tanh(str_v @ params["wtp"].T + params["btp"])
    tc = jnp.tanh(str_v @ params["wtc"].T + params["btc"])
    fvec = jnp.einsum("bik,kl,bil->bi", tp, params["wb"], tc)
    f_ij = jnp.broadcast_to(fvec[:, :, None], (B, N, N))
    f_i = jnp.exp(jnp.einsum("bik,k->bi", str_v, params["wfi"][0]))
    mask = 1.0 - jnp.eye(N, dtype=x.dtype)
    A = jnp.exp(f_ij) * mask[None]
    tmp = jnp.sum(A, axis=1)
    L = -A + jnp.eye(N, dtype=x.dtype)[None] * tmp[:, None, :]
    Lbar = L.at[:, 0, :].set(f_i)
    Linv = jnp.linalg.inv(Lbar)
    diag = jnp.diagonal(Linv, axis1=-2, axis2=-1)
    tmp1 = A * diag[:, None, :]
    tmp2 = A * jnp.swapaxes(Linv, 1, 2)
    mask1 = jnp.concatenate([jnp.zeros((B, N, 1)), jnp.ones((B, N, N - 1))], 2)
    mask2 = jnp.concatenate([jnp.zeros((B, 1, N)), jnp.ones((B, N - 1, N))], 1)
    dx = mask1 * tmp1 - mask2 * tmp2
    adj = jnp.swapaxes(dx, 1, 2)                     # df[:, :, 1:]

    denom = jnp.sum(adj, axis=2, keepdims=True) + 1.0
    outputs = x
    cache = [x]
    outs = []
    for l in range(gcn_layer):
        wl, bl = params["gcn_w"][l], params["gcn_b"][l]
        Ax = jnp.einsum("bij,bjk->bik", adj, outputs)
        AxW = Ax @ wl.T + bl + outputs @ wl.T + bl
        g = jax.nn.relu(AxW / denom)
        cache.append(g)
        outputs = jnp.concatenate(cache, axis=2)
        outs.append(g)
    gcn_out = jnp.concatenate(outs, axis=2) + x
    return gcn_out @ params["wo"].T + params["bo"]


# ----------------------------------------------------------------------------
# Deterministic parameter init + main
# ----------------------------------------------------------------------------
def _xavier(key, shape):
    fan_out, fan_in = shape[0], shape[-1]
    bound = float(np.sqrt(6.0 / (fan_in + fan_out)))
    return jax.random.uniform(key, shape, jnp.float32, -bound, bound)


def init_params(key, hidden_size, gcn_layer):
    sem = hidden_size // 2
    ds = hidden_size - sem
    head_dim = hidden_size // gcn_layer
    keys = jax.random.split(key, 8 + gcn_layer)
    params = {
        "wtp": _xavier(keys[0], (ds, ds)),
        "btp": jnp.zeros((1, ds), jnp.float32),
        "wtc": _xavier(keys[1], (ds, ds)),
        "btc": jnp.zeros((1, ds), jnp.float32),
        "wfi": _xavier(keys[2], (1, ds)),
        "wb": _xavier(keys[3], (ds, ds)),            # bilinear.weight[0]
        "wo": _xavier(keys[4], (hidden_size, hidden_size)),
        "bo": jnp.zeros((1, hidden_size), jnp.float32),
        "gcn_w": [],
        "gcn_b": [],
    }
    for l in range(gcn_layer):
        in_dim = hidden_size + head_dim * l
        params["gcn_w"].append(_xavier(keys[5 + l], (head_dim, in_dim)))
        params["gcn_b"].append(jnp.zeros((1, head_dim), jnp.float32))
    return params


if __name__ == "__main__":
    B, N, H = 2, 8, 32          # batch, tokens, hidden
    gcn_layer = 2               # DynamicReasoner(hidden_size=32, gcn_layer=2, dropout_gcn=0.0)

    key = jax.random.PRNGKey(0)
    kp, kx = jax.random.split(key)
    params = init_params(kp, H, gcn_layer)
    x = jax.random.normal(kx, (B, N, H), jnp.float32)

    out = dynamic_reasoner_forward(x, params, gcn_layer)
    out = jax.block_until_ready(out)

    ref = reference_forward(x, params, gcn_layer)
    assert out.shape == (B, N, H)
    np.testing.assert_allclose(np.asarray(out), np.asarray(ref),
                               rtol=2e-2, atol=2e-2)
    print("KERNEL_OK")
</pallas_src>

<mosaic_0001>
module attributes {stable_mosaic.version = 11 : i64} {
  func.func @kernel(%arg0: i32, %arg1: memref<16x32xf32, #tpu.memory_space<vmem>>, %arg2: memref<184x32xf32, #tpu.memory_space<vmem>>, %arg3: memref<16x32xf32, #tpu.memory_space<vmem>>) attributes {dimension_semantics = [#tpu.dimension_semantics<parallel>], iteration_bounds = array<i64: 1>, scalar_prefetch = 0 : i64, scratch_operands = 0 : i64, tpu.core_type = #tpu.core_type<tc>, window_params = [{transform_indices = @transform_0, window_bounds = array<i64: 16, 32>}, {pipeline_mode = #tpu.pipeline_mode<synchronous>, transform_indices = @transform_1, window_bounds = array<i64: 184, 32>}, {transform_indices = @transform_2, window_bounds = array<i64: 16, 32>}]} {
    %c0 = arith.constant 0 : index
    %c0_0 = arith.constant 0 : index
    %0 = vector.load %arg1[%c0, %c0_0] : memref<16x32xf32, #tpu.memory_space<vmem>>, vector<16x32xf32>
    %1 = vector.extract_strided_slice %0 {offsets = [0, 8], sizes = [16, 8], strides = [1, 1]} : vector<16x32xf32> to vector<16x8xf32>
    %2 = vector.extract_strided_slice %0 {offsets = [0, 24], sizes = [16, 8], strides = [1, 1]} : vector<16x32xf32> to vector<16x8xf32>
    %3 = tpu.concatenate %1, %2 in 1 : vector<16x8xf32>, vector<16x8xf32> -> vector<16x16xf32>
    %c0_1 = arith.constant 0 : index
    %c0_2 = arith.constant 0 : index
    %4 = vector.load %arg2[%c0_1, %c0_2] : memref<184x32xf32, #tpu.memory_space<vmem>>, vector<16x32xf32>
    %c16 = arith.constant 16 : index
    %c0_3 = arith.constant 0 : index
    %5 = vector.load %arg2[%c16, %c0_3] : memref<184x32xf32, #tpu.memory_space<vmem>>, vector<1x32xf32>
    %c24 = arith.constant 24 : index
    %c0_4 = arith.constant 0 : index
    %6 = vector.load %arg2[%c24, %c0_4] : memref<184x32xf32, #tpu.memory_space<vmem>>, vector<1x16xf32>
    %c32 = arith.constant 32 : index
    %c0_5 = arith.constant 0 : index
    %7 = vector.load %arg2[%c32, %c0_5] : memref<184x32xf32, #tpu.memory_space<vmem>>, vector<16x16xf32>
    %cst = arith.constant dense<0.000000e+00> : vector<16x32xf32>
    %8 = tpu.matmul %3, %4, %cst {dimension_numbers = #tpu.dot_dimension_numbers<[1], [0], [0], [1], [0, 0, 1, 1], [], []>} : vector<16x16xf32>, vector<16x32xf32>, vector<16x32xf32> -> vector<16x32xf32>
    %9 = vector.broadcast %5 : vector<1x32xf32> to vector<16x32xf32>
    %10 = arith.addf %8, %9 : vector<16x32xf32>
    %11 = math.tanh %10 : vector<16x32xf32>
    %12 = vector.extract_strided_slice %11 {offsets = [0, 0], sizes = [16, 16], strides = [1, 1]} : vector<16x32xf32> to vector<16x16xf32>
    %13 = vector.extract_strided_slice %11 {offsets = [0, 16], sizes = [16, 16], strides = [1, 1]} : vector<16x32xf32> to vector<16x16xf32>
    %cst_6 = arith.constant dense<0.000000e+00> : vector<16x16xf32>
    %14 = tpu.matmul %12, %7, %cst_6 {dimension_numbers = #tpu.dot_dimension_numbers<[1], [0], [0], [1], [0, 0, 1, 1], [], []>} : vector<16x16xf32>, vector<16x16xf32>, vector<16x16xf32> -> vector<16x16xf32>
    %15 = arith.mulf %14, %13 : vector<16x16xf32>
    %cst_7 = arith.constant dense<0.000000e+00> : vector<16xf32>
    %16 = vector.multi_reduction <add>, %15, %cst_7 [1] : vector<16x16xf32> to vector<16xf32>
    %17 = vector.shape_cast %16 : vector<16xf32> to vector<16x1xf32>
    %18 = math.exp %17 : vector<16x1xf32>
    %19 = vector.broadcast %6 : vector<1x16xf32> to vector<16x16xf32>
    %20 = arith.mulf %3, %19 : vector<16x16xf32>
    %cst_8 = arith.constant dense<0.000000e+00> : vector<16xf32>
    %21 = vector.multi_reduction <add>, %20, %cst_8 [1] : vector<16x16xf32> to vector<16xf32>
    %22 = vector.shape_cast %21 : vector<16xf32> to vector<16x1xf32>
    %23 = math.exp %22 : vector<16x1xf32>
    %24 = tpu.iota {dimensions = array<i32: 0>} : vector<8x8xi32>
    %25 = tpu.iota {dimensions = array<i32: 1>} : vector<8x8xi32>
    %26 = arith.cmpi eq, %24, %25 : vector<8x8xi32>
    %27 = arith.cmpi ne, %24, %25 : vector<8x8xi32>
    %c0_i32 = arith.constant 0 : i32
    %28 = vector.broadcast %c0_i32 : i32 to vector<8x8xi32>
    %29 = arith.cmpi eq, %24, %28 : vector<8x8xi32>
    %c0_i32_9 = arith.constant 0 : i32
    %30 = vector.broadcast %c0_i32_9 : i32 to vector<8x8xi32>
    %31 = arith.cmpi sgt, %24, %30 : vector<8x8xi32>
    %c0_i32_10 = arith.constant 0 : i32
    %32 = vector.broadcast %c0_i32_10 : i32 to vector<8x8xi32>
    %33 = arith.cmpi sgt, %25, %32 : vector<8x8xi32>
    %cst_11 = arith.constant 1.000000e+00 : f32
    %cst_12 = arith.constant 0.000000e+00 : f32
    %34 = vector.broadcast %cst_11 : f32 to vector<8x8xf32>
    %35 = vector.broadcast %cst_12 : f32 to vector<8x8xf32>
    %36 = arith.select %26, %34, %35 : vector<8x8xi1>, vector<8x8xf32>
    %37 = vector.extract_strided_slice %18 {offsets = [0, 0], sizes = [8, 1], strides = [1, 1]} : vector<16x1xf32> to vector<8x1xf32>
    %38 = vector.extract_strided_slice %23 {offsets = [0, 0], sizes = [8, 1], strides = [1, 1]} : vector<16x1xf32> to vector<8x1xf32>
    %39 = vector.shape_cast %37 : vector<8x1xf32> to vector<8x1xf32>
    %40 = vector.broadcast %39 : vector<8x1xf32> to vector<8x8xf32>
    %cst_13 = arith.constant 0.000000e+00 : f32
    %41 = vector.broadcast %cst_13 : f32 to vector<8x8xf32>
    %42 = arith.select %26, %40, %41 : vector<8x8xi1>, vector<8x8xf32>
    %cst_14 = arith.constant dense<0.000000e+00> : vector<8xf32>
    %43 = vector.multi_reduction <add>, %42, %cst_14 [0] : vector<8x8xf32> to vector<8xf32>
    %44 = vector.shape_cast %43 : vector<8xf32> to vector<1x8xf32>
    %45 = vector.shape_cast %38 : vector<8x1xf32> to vector<8x1xf32>
    %46 = vector.broadcast %45 : vector<8x1xf32> to vector<8x8xf32>
    %cst_15 = arith.constant 0.000000e+00 : f32
    %47 = vector.broadcast %cst_15 : f32 to vector<8x8xf32>
    %48 = arith.select %26, %46, %47 : vector<8x8xi1>, vector<8x8xf32>
    %cst_16 = arith.constant dense<0.000000e+00> : vector<8xf32>
    %49 = vector.multi_reduction <add>, %48, %cst_16 [0] : vector<8x8xf32> to vector<8xf32>
    %50 = vector.shape_cast %49 : vector<8xf32> to vector<1x8xf32>
    %cst_17 = arith.constant dense<0.000000e+00> : vector<1xf32>
    %51 = vector.multi_reduction <add>, %37, %cst_17 [0] : vector<8x1xf32> to vector<1xf32>
    %52 = vector.shape_cast %51 : vector<1xf32> to vector<1x1xf32>
    %53 = vector.broadcast %52 : vector<1x1xf32> to vector<8x1xf32>
    %54 = arith.subf %53, %37 : vector<8x1xf32>
    %55 = vector.shape_cast %54 : vector<8x1xf32> to vector<8x1xf32>
    %56 = vector.broadcast %55 : vector<8x1xf32> to vector<8x8xf32>
    %cst_18 = arith.constant 0.000000e+00 : f32
    %57 = vector.broadcast %cst_18 : f32 to vector<8x1xf32>
    %58 = arith.subf %57, %37 : vector<8x1xf32>
    %59 = vector.shape_cast %58 : vector<8x1xf32> to vector<8x1xf32>
    %60 = vector.broadcast %59 : vector<8x1xf32> to vector<8x8xf32>
    %61 = arith.select %26, %56, %60 : vector<8x8xi1>, vector<8x8xf32>
    %62 = vector.shape_cast %50 : vector<1x8xf32> to vector<1x8xf32>
    %63 = vector.broadcast %62 : vector<1x8xf32> to vector<8x8xf32>
    %64 = arith.select %29, %63, %61 : vector<8x8xi1>, vector<8x8xf32>
    %65 = vector.extract_strided_slice %64 {offsets = [0, 0], sizes = [1, 8], strides = [1, 1]} : vector<8x8xf32> to vector<1x8xf32>
    %66 = vector.extract_strided_slice %36 {offsets = [0, 0], sizes = [1, 8], strides = [1, 1]} : vector<8x8xf32> to vector<1x8xf32>
    %67 = vector.extract_strided_slice %65 {offsets = [0, 0], sizes = [1, 1], strides = [1, 1]} : vector<1x8xf32> to vector<1x1xf32>
    %cst_19 = arith.constant 1.000000e+00 : f32
    %68 = vector.broadcast %cst_19 : f32 to vector<1x1xf32>
    %69 = arith.divf %68, %67 : vector<1x1xf32>
    %70 = vector.broadcast %69 : vector<1x1xf32> to vector<1x8xf32>
    %71 = arith.mulf %65, %70 : vector<1x8xf32>
    %72 = vector.broadcast %69 : vector<1x1xf32> to vector<1x8xf32>
    %73 = arith.mulf %66, %72 : vector<1x8xf32>
    %74 = vector.extract_strided_slice %64 {offsets = [0, 0], sizes = [8, 1], strides = [1, 1]} : vector<8x8xf32> to vector<8x1xf32>
    %c0_i32_20 = arith.constant 0 : i32
    %75 = vector.broadcast %c0_i32_20 : i32 to vector<8x8xi32>
    %76 = arith.cmpi eq, %24, %75 : vector<8x8xi32>
    %77 = vector.broadcast %74 : vector<8x1xf32> to vector<8x8xf32>
    %78 = vector.broadcast %71 : vector<1x8xf32> to vector<8x8xf32>
    %79 = arith.mulf %77, %78 : vector<8x8xf32>
    %80 = arith.subf %64, %79 : vector<8x8xf32>
    %81 = vector.shape_cast %71 : vector<1x8xf32> to vector<1x8xf32>
    %82 = vector.broadcast %81 : vector<1x8xf32> to vector<8x8xf32>
    %83 = arith.select %76, %82, %80 : vector<8x8xi1>, vector<8x8xf32>
    %84 = vector.broadcast %74 : vector<8x1xf32> to vector<8x8xf32>
    %85 = vector.broadcast %73 : vector<1x8xf32> to vector<8x8xf32>
    %86 = arith.mulf %84, %85 : vector<8x8xf32>
    %87 = arith.subf %36, %86 : vector<8x8xf32>
    %88 = vector.shape_cast %73 : vector<1x8xf32> to vector<1x8xf32>
    %89 = vector.broadcast %88 : vector<1x8xf32> to vector<8x8xf32>
    %90 = arith.select %76, %89, %87 : vector<8x8xi1>, vector<8x8xf32>
    %91 = vector.extract_strided_slice %83 {offsets = [1, 0], sizes = [1, 8], strides = [1, 1]} : vector<8x8xf32> to vector<1x8xf32>
    %92 = vector.extract_strided_slice %90 {offsets = [1, 0], sizes = [1, 8], strides = [1, 1]} : vector<8x8xf32> to vector<1x8xf32>
    %93 = vector.extract_strided_slice %91 {offsets = [0, 1], sizes = [1, 1], strides = [1, 1]} : vector<1x8xf32> to vector<1x1xf32>
    %cst_21 = arith.constant 1.000000e+00 : f32
    %94 = vector.broadcast %cst_21 : f32 to vector<1x1xf32>
    %95 = arith.divf %94, %93 : vector<1x1xf32>
    %96 = vector.broadcast %95 : vector<1x1xf32> to vector<1x8xf32>
    %97 = arith.mulf %91, %96 : vector<1x8xf32>
    %98 = vector.broadcast %95 : vector<1x1xf32> to vector<1x8xf32>
    %99 = arith.mulf %92, %98 : vector<1x8xf32>
    %100 = vector.extract_strided_slice %83 {offsets = [0, 1], sizes = [8, 1], strides = [1, 1]} : vector<8x8xf32> to vector<8x1xf32>
    %c1_i32 = arith.constant 1 : i32
    %101 = vector.broadcast %c1_i32 : i32 to vector<8x8xi32>
    %102 = arith.cmpi eq, %24, %101 : vector<8x8xi32>
    %103 = vector.broadcast %100 : vector<8x1xf32> to vector<8x8xf32>
    %104 = vector.broadcast %97 : vector<1x8xf32> to vector<8x8xf32>
    %105 = arith.mulf %103, %104 : vector<8x8xf32>
    %106 = arith.subf %83, %105 : vector<8x8xf32>
    %107 = vector.shape_cast %97 : vector<1x8xf32> to vector<1x8xf32>
    %108 = vector.broadcast %107 : vector<1x8xf32> to vector<8x8xf32>
    %109 = arith.select %102, %108, %106 : vector<8x8xi1>, vector<8x8xf32>
    %110 = vector.broadcast %100 : vector<8x1xf32> to vector<8x8xf32>
    %111 = vector.broadcast %99 : vector<1x8xf32> to vector<8x8xf32>
    %112 = arith.mulf %110, %111 : vector<8x8xf32>
    %113 = arith.subf %90, %112 : vector<8x8xf32>
    %114 = vector.shape_cast %99 : vector<1x8xf32> to vector<1x8xf32>
    %115 = vector.broadcast %114 : vector<1x8xf32> to vector<8x8xf32>
    %116 = arith.select %102, %115, %113 : vector<8x8xi1>, vector<8x8xf32>
    %117 = vector.extract_strided_slice %109 {offsets = [2, 0], sizes = [1, 8], strides = [1, 1]} : vector<8x8xf32> to vector<1x8xf32>
    %118 = vector.extract_strided_slice %116 {offsets = [2, 0], sizes = [1, 8], strides = [1, 1]} : vector<8x8xf32> to vector<1x8xf32>
    %119 = vector.extract_strided_slice %117 {offsets = [0, 2], sizes = [1, 1], strides = [1, 1]} : vector<1x8xf32> to vector<1x1xf32>
    %cst_22 = arith.constant 1.000000e+00 : f32
    %120 = vector.broadcast %cst_22 : f32 to vector<1x1xf32>
    %121 = arith.divf %120, %119 : vector<1x1xf32>
    %122 = vector.broadcast %121 : vector<1x1xf32> to vector<1x8xf32>
    %123 = arith.mulf %117, %122 : vector<1x8xf32>
    %124 = vector.broadcast %121 : vector<1x1xf32> to vector<1x8xf32>
    %125 = arith.mulf %118, %124 : vector<1x8xf32>
    %126 = vector.extract_strided_slice %109 {offsets = [0, 2], sizes = [8, 1], strides = [1, 1]} : vector<8x8xf32> to vector<8x1xf32>
    %c2_i32 = arith.constant 2 : i32
    %127 = vector.broadcast %c2_i32 : i32 to vector<8x8xi32>
    %128 = arith.cmpi eq, %24, %127 : vector<8x8xi32>
    %129 = vector.broadcast %126 : vector<8x1xf32> to vector<8x8xf32>
    %130 = vector.broadcast %123 : vector<1x8xf32> to vector<8x8xf32>
    %131 = arith.mulf %129, %130 : vector<8x8xf32>
    %132 = arith.subf %109, %131 : vector<8x8xf32>
    %133 = vector.shape_cast %123 : vector<1x8xf32> to vector<1x8xf32>
    %134 = vector.broadcast %133 : vector<1x8xf32> to vector<8x8xf32>
    %135 = arith.select %128, %134, %132 : vector<8x8xi1>, vector<8x8xf32>
    %136 = vector.broadcast %126 : vector<8x1xf32> to vector<8x8xf32>
    %137 = vector.broadcast %125 : vector<1x8xf32> to vector<8x8xf32>
    %138 = arith.mulf %136, %137 : vector<8x8xf32>
    %139 = arith.subf %116, %138 : vector<8x8xf32>
    %140 = vector.shape_cast %125 : vector<1x8xf32> to vector<1x8xf32>
    %141 = vector.broadcast %140 : vector<1x8xf32> to vector<8x8xf32>
    %142 = arith.select %128, %141, %139 : vector<8x8xi1>, vector<8x8xf32>
    %143 = vector.extract_strided_slice %135 {offsets = [3, 0], sizes = [1, 8], strides = [1, 1]} : vector<8x8xf32> to vector<1x8xf32>
    %144 = vector.extract_strided_slice %142 {offsets = [3, 0], sizes = [1, 8], strides = [1, 1]} : vector<8x8xf32> to vector<1x8xf32>
    %145 = vector.extract_strided_slice %143 {offsets = [0, 3], sizes = [1, 1], strides = [1, 1]} : vector<1x8xf32> to vector<1x1xf32>
    %cst_23 = arith.constant 1.000000e+00 : f32
    %146 = vector.broadcast %cst_23 : f32 to vector<1x1xf32>
    %147 = arith.divf %146, %145 : vector<1x1xf32>
    %148 = vector.broadcast %147 : vector<1x1xf32> to vector<1x8xf32>
    %149 = arith.mulf %143, %148 : vector<1x8xf32>
    %150 = vector.broadcast %147 : vector<1x1xf32> to vector<1x8xf32>
    %151 = arith.mulf %144, %150 : vector<1x8xf32>
    %152 = vector.extract_strided_slice %135 {offsets = [0, 3], sizes = [8, 1], strides = [1, 1]} : vector<8x8xf32> to vector<8x1xf32>
    %c3_i32 = arith.constant 3 : i32
    %153 = vector.broadcast %c3_i32 : i32 to vector<8x8xi32>
    %154 = arith.cmpi eq, %24, %153 : vector<8x8xi32>
    %155 = vector.broadcast %152 : vector<8x1xf32> to vector<8x8xf32>
    %156 = vector.broadcast %149 : vector<1x8xf32> to vector<8x8xf32>
    %157 = arith.mulf %155, %156 : vector<8x8xf32>
    %158 = arith.subf %135, %157 : vector<8x8xf32>
    %159 = vector.shape_cast %149 : vector<1x8xf32> to vector<1x8xf32>
    %160 = vector.broadcast %159 : vector<1x8xf32> to vector<8x8xf32>
    %161 = arith.select %154, %160, %158 : vector<8x8xi1>, vector<8x8xf32>
    %162 = vector.broadcast %152 : vector<8x1xf32> to vector<8x8xf32>
    %163 = vector.broadcast %151 : vector<1x8xf32> to vector<8x8xf32>
    %164 = arith.mulf %162, %163 : vector<8x8xf32>
    %165 = arith.subf %142, %164 : vector<8x8xf32>
    %166 = vector.shape_cast %151 : vector<1x8xf32> to vector<1x8xf32>
    %167 = vector.broadcast %166 : vector<1x8xf32> to vector<8x8xf32>
    %168 = arith.select %154, %167, %165 : vector<8x8xi1>, vector<8x8xf32>
    %169 = vector.extract_strided_slice %161 {offsets = [4, 0], sizes = [1, 8], strides = [1, 1]} : vector<8x8xf32> to vector<1x8xf32>
    %170 = vector.extract_strided_slice %168 {offsets = [4, 0], sizes = [1, 8], strides = [1, 1]} : vector<8x8xf32> to vector<1x8xf32>
    %171 = vector.extract_strided_slice %169 {offsets = [0, 4], sizes = [1, 1], strides = [1, 1]} : vector<1x8xf32> to vector<1x1xf32>
    %cst_24 = arith.constant 1.000000e+00 : f32
    %172 = vector.broadcast %cst_24 : f32 to vector<1x1xf32>
    %173 = arith.divf %172, %171 : vector<1x1xf32>
    %174 = vector.broadcast %173 : vector<1x1xf32> to vector<1x8xf32>
    %175 = arith.mulf %169, %174 : vector<1x8xf32>
    %176 = vector.broadcast %173 : vector<1x1xf32> to vector<1x8xf32>
    %177 = arith.mulf %170, %176 : vector<1x8xf32>
    %178 = vector.extract_strided_slice %161 {offsets = [0, 4], sizes = [8, 1], strides = [1, 1]} : vector<8x8xf32> to vector<8x1xf32>
    %c4_i32 = arith.constant 4 : i32
    %179 = vector.broadcast %c4_i32 : i32 to vector<8x8xi32>
    %180 = arith.cmpi eq, %24, %179 : vector<8x8xi32>
    %181 = vector.broadcast %178 : vector<8x1xf32> to vector<8x8xf32>
    %182 = vector.broadcast %175 : vector<1x8xf32> to vector<8x8xf32>
    %183 = arith.mulf %181, %182 : vector<8x8xf32>
    %184 = arith.subf %161, %183 : vector<8x8xf32>
    %185 = vector.shape_cast %175 : vector<1x8xf32> to vector<1x8xf32>
    %186 = vector.broadcast %185 : vector<1x8xf32> to vector<8x8xf32>
    %187 = arith.select %180, %186, %184 : vector<8x8xi1>, vector<8x8xf32>
    %188 = vector.broadcast %178 : vector<8x1xf32> to vector<8x8xf32>
    %189 = vector.broadcast %177 : vector<1x8xf32> to vector<8x8xf32>
    %190 = arith.mulf %188, %189 : vector<8x8xf32>
    %191 = arith.subf %168, %190 : vector<8x8xf32>
    %192 = vector.shape_cast %177 : vector<1x8xf32> to vector<1x8xf32>
    %193 = vector.broadcast %192 : vector<1x8xf32> to vector<8x8xf32>
    %194 = arith.select %180, %193, %191 : vector<8x8xi1>, vector<8x8xf32>
    %195 = vector.extract_strided_slice %187 {offsets = [5, 0], sizes = [1, 8], strides = [1, 1]} : vector<8x8xf32> to vector<1x8xf32>
    %196 = vector.extract_strided_slice %194 {offsets = [5, 0], sizes = [1, 8], strides = [1, 1]} : vector<8x8xf32> to vector<1x8xf32>
    %197 = vector.extract_strided_slice %195 {offsets = [0, 5], sizes = [1, 1], strides = [1, 1]} : vector<1x8xf32> to vector<1x1xf32>
    %cst_25 = arith.constant 1.000000e+00 : f32
    %198 = vector.broadcast %cst_25 : f32 to vector<1x1xf32>
    %199 = arith.divf %198, %197 : vector<1x1xf32>
    %200 = vector.broadcast %199 : vector<1x1xf32> to vector<1x8xf32>
    %201 = arith.mulf %195, %200 : vector<1x8xf32>
    %202 = vector.broadcast %199 : vector<1x1xf32> to vector<1x8xf32>
    %203 = arith.mulf %196, %202 : vector<1x8xf32>
    %204 = vector.extract_strided_slice %187 {offsets = [0, 5], sizes = [8, 1], strides = [1, 1]} : vector<8x8xf32> to vector<8x1xf32>
    %c5_i32 = arith.constant 5 : i32
    %205 = vector.broadcast %c5_i32 : i32 to vector<8x8xi32>
    %206 = arith.cmpi eq, %24, %205 : vector<8x8xi32>
    %207 = vector.broadcast %204 : vector<8x1xf32> to vector<8x8xf32>
    %208 = vector.broadcast %201 : vector<1x8xf32> to vector<8x8xf32>
    %209 = arith.mulf %207, %208 : vector<8x8xf32>
    %210 = arith.subf %187, %209 : vector<8x8xf32>
    %211 = vector.shape_cast %201 : vector<1x8xf32> to vector<1x8xf32>
    %212 = vector.broadcast %211 : vector<1x8xf32> to vector<8x8xf32>
    %213 = arith.select %206, %212, %210 : vector<8x8xi1>, vector<8x8xf32>
    %214 = vector.broadcast %204 : vector<8x1xf32> to vector<8x8xf32>
    %215 = vector.broadcast %203 : vector<1x8xf32> to vector<8x8xf32>
    %216 = arith.mulf %214, %215 : vector<8x8xf32>
    %217 = arith.subf %194, %216 : vector<8x8xf32>
    %218 = vector.shape_cast %203 : vector<1x8xf32> to vector<1x8xf32>
    %219 = vector.broadcast %218 : vector<1x8xf32> to vector<8x8xf32>
    %220 = arith.select %206, %219, %217 : vector<8x8xi1>, vector<8x8xf32>
    %221 = vector.extract_strided_slice %213 {offsets = [6, 0], sizes = [1, 8], strides = [1, 1]} : vector<8x8xf32> to vector<1x8xf32>
    %222 = vector.extract_strided_slice %220 {offsets = [6, 0], sizes = [1, 8], strides = [1, 1]} : vector<8x8xf32> to vector<1x8xf32>
    %223 = vector.extract_strided_slice %221 {offsets = [0, 6], sizes = [1, 1], strides = [1, 1]} : vector<1x8xf32> to vector<1x1xf32>
    %cst_26 = arith.constant 1.000000e+00 : f32
    %224 = vector.broadcast %cst_26 : f32 to vector<1x1xf32>
    %225 = arith.divf %224, %223 : vector<1x1xf32>
    %226 = vector.broadcast %225 : vector<1x1xf32> to vector<1x8xf32>
    %227 = arith.mulf %221, %226 : vector<1x8xf32>
    %228 = vector.broadcast %225 : vector<1x1xf32> to vector<1x8xf32>
    %229 = arith.mulf %222, %228 : vector<1x8xf32>
    %230 = vector.extract_strided_slice %213 {offsets = [0, 6], sizes = [8, 1], strides = [1, 1]} : vector<8x8xf32> to vector<8x1xf32>
    %c6_i32 = arith.constant 6 : i32
    %231 = vector.broadcast %c6_i32 : i32 to vector<8x8xi32>
    %232 = arith.cmpi eq, %24, %231 : vector<8x8xi32>
    %233 = vector.broadcast %230 : vector<8x1xf32> to vector<8x8xf32>
    %234 = vector.broadcast %227 : vector<1x8xf32> to vector<8x8xf32>
    %235 = arith.mulf %233, %234 : vector<8x8xf32>
    %236 = arith.subf %213, %235 : vector<8x8xf32>
    %237 = vector.shape_cast %227 : vector<1x8xf32> to vector<1x8xf32>
    %238 = vector.broadcast %237 : vector<1x8xf32> to vector<8x8xf32>
    %239 = arith.select %232, %238, %236 : vector<8x8xi1>, vector<8x8xf32>
    %240 = vector.broadcast %230 : vector<8x1xf32> to vector<8x8xf32>
    %241 = vector.broadcast %229 : vector<1x8xf32> to vector<8x8xf32>
    %242 = arith.mulf %240, %241 : vector<8x8xf32>
    %243 = arith.subf %220, %242 : vector<8x8xf32>
    %244 = vector.shape_cast %229 : vector<1x8xf32> to vector<1x8xf32>
    %245 = vector.broadcast %244 : vector<1x8xf32> to vector<8x8xf32>
    %246 = arith.select %232, %245, %243 : vector<8x8xi1>, vector<8x8xf32>
    %247 = vector.extract_strided_slice %239 {offsets = [7, 0], sizes = [1, 8], strides = [1, 1]} : vector<8x8xf32> to vector<1x8xf32>
    %248 = vector.extract_strided_slice %246 {offsets = [7, 0], sizes = [1, 8], strides = [1, 1]} : vector<8x8xf32> to vector<1x8xf32>
    %249 = vector.extract_strided_slice %247 {offsets = [0, 7], sizes = [1, 1], strides = [1, 1]} : vector<1x8xf32> to vector<1x1xf32>
    %cst_27 = arith.constant 1.000000e+00 : f32
    %250 = vector.broadcast %cst_27 : f32 to vector<1x1xf32>
    %251 = arith.divf %250, %249 : vector<1x1xf32>
    %252 = vector.broadcast %251 : vector<1x1xf32> to vector<1x8xf32>
    %253 = arith.mulf %248, %252 : vector<1x8xf32>
    %254 = vector.extract_strided_slice %239 {offsets = [0, 7], sizes = [8, 1], strides = [1, 1]} : vector<8x8xf32> to vector<8x1xf32>
    %c7_i32 = arith.constant 7 : i32
    %255 = vector.broadcast %c7_i32 : i32 to vector<8x8xi32>
    %256 = arith.cmpi eq, %24, %255 : vector<8x8xi32>
    %257 = vector.broadcast %254 : vector<8x1xf32> to vector<8x8xf32>
    %258 = vector.broadcast %253 : vector<1x8xf32> to vector<8x8xf32>
    %259 = arith.mulf %257, %258 : vector<8x8xf32>
    %260 = arith.subf %246, %259 : vector<8x8xf32>
    %261 = vector.shape_cast %253 : vector<1x8xf32> to vector<1x8xf32>
    %262 = vector.broadcast %261 : vector<1x8xf32> to vector<8x8xf32>
    %263 = arith.select %256, %262, %260 : vector<8x8xi1>, vector<8x8xf32>
    %cst_28 = arith.constant 0.000000e+00 : f32
    %264 = vector.broadcast %cst_28 : f32 to vector<8x8xf32>
    %265 = arith.select %26, %263, %264 : vector<8x8xi1>, vector<8x8xf32>
    %cst_29 = arith.constant dense<0.000000e+00> : vector<8xf32>
    %266 = vector.multi_reduction <add>, %265, %cst_29 [1] : vector<8x8xf32> to vector<8xf32>
    %267 = vector.shape_cast %266 : vector<8xf32> to vector<8x1xf32>
    %268 = vector.shape_cast %44 : vector<1x8xf32> to vector<1x8xf32>
    %269 = vector.broadcast %268 : vector<1x8xf32> to vector<8x8xf32>
    %cst_30 = arith.constant 0.000000e+00 : f32
    %270 = vector.broadcast %cst_30 : f32 to vector<8x8xf32>
    %271 = arith.select %27, %269, %270 : vector<8x8xi1>, vector<8x8xf32>
    %272 = vector.broadcast %267 : vector<8x1xf32> to vector<8x8xf32>
    %273 = arith.mulf %271, %272 : vector<8x8xf32>
    %cst_31 = arith.constant 0.000000e+00 : f32
    %274 = vector.broadcast %cst_31 : f32 to vector<8x8xf32>
    %275 = arith.select %31, %273, %274 : vector<8x8xi1>, vector<8x8xf32>
    %276 = arith.mulf %271, %263 : vector<8x8xf32>
    %cst_32 = arith.constant 0.000000e+00 : f32
    %277 = vector.broadcast %cst_32 : f32 to vector<8x8xf32>
    %278 = arith.select %33, %276, %277 : vector<8x8xi1>, vector<8x8xf32>
    %279 = arith.subf %275, %278 : vector<8x8xf32>
    %cst_33 = arith.constant dense<0.000000e+00> : vector<8xf32>
    %280 = vector.multi_reduction <add>, %279, %cst_33 [1] : vector<8x8xf32> to vector<8xf32>
    %281 = vector.shape_cast %280 : vector<8xf32> to vector<8x1xf32>
    %cst_34 = arith.constant 1.000000e+00 : f32
    %282 = vector.broadcast %cst_34 : f32 to vector<8x1xf32>
    %283 = arith.addf %281, %282 : vector<8x1xf32>
    %284 = vector.extract_strided_slice %18 {offsets = [8, 0], sizes = [8, 1], strides = [1, 1]} : vector<16x1xf32> to vector<8x1xf32>
    %285 = vector.extract_strided_slice %23 {offsets = [8, 0], sizes = [8, 1], strides = [1, 1]} : vector<16x1xf32> to vector<8x1xf32>
    %286 = vector.shape_cast %284 : vector<8x1xf32> to vector<8x1xf32>
    %287 = vector.broadcast %286 : vector<8x1xf32> to vector<8x8xf32>
    %cst_35 = arith.constant 0.000000e+00 : f32
    %288 = vector.broadcast %cst_35 : f32 to vector<8x8xf32>
    %289 = arith.select %26, %287, %288 : vector<8x8xi1>, vector<8x8xf32>
    %cst_36 = arith.constant dense<0.000000e+00> : vector<8xf32>
    %290 = vector.multi_reduction <add>, %289, %cst_36 [0] : vector<8x8xf32> to vector<8xf32>
    %291 = vector.shape_cast %290 : vector<8xf32> to vector<1x8xf32>
    %292 = vector.shape_cast %285 : vector<8x1xf32> to vector<8x1xf32>
    %293 = vector.broadcast %292 : vector<8x1xf32> to vector<8x8xf32>
    %cst_37 = arith.constant 0.000000e+00 : f32
    %294 = vector.broadcast %cst_37 : f32 to vector<8x8xf32>
    %295 = arith.select %26, %293, %294 : vector<8x8xi1>, vector<8x8xf32>
    %cst_38 = arith.constant dense<0.000000e+00> : vector<8xf32>
    %296 = vector.multi_reduction <add>, %295, %cst_38 [0] : vector<8x8xf32> to vector<8xf32>
    %297 = vector.shape_cast %296 : vector<8xf32> to vector<1x8xf32>
    %cst_39 = arith.constant dense<0.000000e+00> : vector<1xf32>
    %298 = vector.multi_reduction <add>, %284, %cst_39 [0] : vector<8x1xf32> to vector<1xf32>
    %299 = vector.shape_cast %298 : vector<1xf32> to vector<1x1xf32>
    %300 = vector.broadcast %299 : vector<1x1xf32> to vector<8x1xf32>
    %301 = arith.subf %300, %284 : vector<8x1xf32>
    %302 = vector.shape_cast %301 : vector<8x1xf32> to vector<8x1xf32>
    %303 = vector.broadcast %302 : vector<8x1xf32> to vector<8x8xf32>
    %cst_40 = arith.constant 0.000000e+00 : f32
    %304 = vector.broadcast %cst_40 : f32 to vector<8x1xf32>
    %305 = arith.subf %304, %284 : vector<8x1xf32>
    %306 = vector.shape_cast %305 : vector<8x1xf32> to vector<8x1xf32>
    %307 = vector.broadcast %306 : vector<8x1xf32> to vector<8x8xf32>
    %308 = arith.select %26, %303, %307 : vector<8x8xi1>, vector<8x8xf32>
    %309 = vector.shape_cast %297 : vector<1x8xf32> to vector<1x8xf32>
    %310 = vector.broadcast %309 : vector<1x8xf32> to vector<8x8xf32>
    %311 = arith.select %29, %310, %308 : vector<8x8xi1>, vector<8x8xf32>
    %312 = vector.extract_strided_slice %311 {offsets = [0, 0], sizes = [1, 8], strides = [1, 1]} : vector<8x8xf32> to vector<1x8xf32>
    %313 = vector.extract_strided_slice %36 {offsets = [0, 0], sizes = [1, 8], strides = [1, 1]} : vector<8x8xf32> to vector<1x8xf32>
    %314 = vector.extract_strided_slice %312 {offsets = [0, 0], sizes = [1, 1], strides = [1, 1]} : vector<1x8xf32> to vector<1x1xf32>
    %cst_41 = arith.constant 1.000000e+00 : f32
    %315 = vector.broadcast %cst_41 : f32 to vector<1x1xf32>
    %316 = arith.divf %315, %314 : vector<1x1xf32>
    %317 = vector.broadcast %316 : vector<1x1xf32> to vector<1x8xf32>
    %318 = arith.mulf %312, %317 : vector<1x8xf32>
    %319 = vector.broadcast %316 : vector<1x1xf32> to vector<1x8xf32>
    %320 = arith.mulf %313, %319 : vector<1x8xf32>
    %321 = vector.extract_strided_slice %311 {offsets = [0, 0], sizes = [8, 1], strides = [1, 1]} : vector<8x8xf32> to vector<8x1xf32>
    %c0_i32_42 = arith.constant 0 : i32
    %322 = vector.broadcast %c0_i32_42 : i32 to vector<8x8xi32>
    %323 = arith.cmpi eq, %24, %322 : vector<8x8xi32>
    %324 = vector.broadcast %321 : vector<8x1xf32> to vector<8x8xf32>
    %325 = vector.broadcast %318 : vector<1x8xf32> to vector<8x8xf32>
    %326 = arith.mulf %324, %325 : vector<8x8xf32>
    %327 = arith.subf %311, %326 : vector<8x8xf32>
    %328 = vector.shape_cast %318 : vector<1x8xf32> to vector<1x8xf32>
    %329 = vector.broadcast %328 : vector<1x8xf32> to vector<8x8xf32>
    %330 = arith.select %323, %329, %327 : vector<8x8xi1>, vector<8x8xf32>
    %331 = vector.broadcast %321 : vector<8x1xf32> to vector<8x8xf32>
    %332 = vector.broadcast %320 : vector<1x8xf32> to vector<8x8xf32>
    %333 = arith.mulf %331, %332 : vector<8x8xf32>
    %334 = arith.subf %36, %333 : vector<8x8xf32>
    %335 = vector.shape_cast %320 : vector<1x8xf32> to vector<1x8xf32>
    %336 = vector.broadcast %335 : vector<1x8xf32> to vector<8x8xf32>
    %337 = arith.select %323, %336, %334 : vector<8x8xi1>, vector<8x8xf32>
    %338 = vector.extract_strided_slice %330 {offsets = [1, 0], sizes = [1, 8], strides = [1, 1]} : vector<8x8xf32> to vector<1x8xf32>
    %339 = vector.extract_strided_slice %337 {offsets = [1, 0], sizes = [1, 8], strides = [1, 1]} : vector<8x8xf32> to vector<1x8xf32>
    %340 = vector.extract_strided_slice %338 {offsets = [0, 1], sizes = [1, 1], strides = [1, 1]} : vector<1x8xf32> to vector<1x1xf32>
    %cst_43 = arith.constant 1.000000e+00 : f32
    %341 = vector.broadcast %cst_43 : f32 to vector<1x1xf32>
    %342 = arith.divf %341, %340 : vector<1x1xf32>
    %343 = vector.broadcast %342 : vector<1x1xf32> to vector<1x8xf32>
    %344 = arith.mulf %338, %343 : vector<1x8xf32>
    %345 = vector.broadcast %342 : vector<1x1xf32> to vector<1x8xf32>
    %346 = arith.mulf %339, %345 : vector<1x8xf32>
    %347 = vector.extract_strided_slice %330 {offsets = [0, 1], sizes = [8, 1], strides = [1, 1]} : vector<8x8xf32> to vector<8x1xf32>
    %c1_i32_44 = arith.constant 1 : i32
    %348 = vector.broadcast %c1_i32_44 : i32 to vector<8x8xi32>
    %349 = arith.cmpi eq, %24, %348 : vector<8x8xi32>
    %350 = vector.broadcast %347 : vector<8x1xf32> to vector<8x8xf32>
    %351 = vector.broadcast %344 : vector<1x8xf32> to vector<8x8xf32>
    %352 = arith.mulf %350, %351 : vector<8x8xf32>
    %353 = arith.subf %330, %352 : vector<8x8xf32>
    %354 = vector.shape_cast %344 : vector<1x8xf32> to vector<1x8xf32>
    %355 = vector.broadcast %354 : vector<1x8xf32> to vector<8x8xf32>
    %356 = arith.select %349, %355, %353 : vector<8x8xi1>, vector<8x8xf32>
    %357 = vector.broadcast %347 : vector<8x1xf32> to vector<8x8xf32>
    %358 = vector.broadcast %346 : vector<1x8xf32> to vector<8x8xf32>
    %359 = arith.mulf %357, %358 : vector<8x8xf32>
    %360 = arith.subf %337, %359 : vector<8x8xf32>
    %361 = vector.shape_cast %346 : vector<1x8xf32> to vector<1x8xf32>
    %362 = vector.broadcast %361 : vector<1x8xf32> to vector<8x8xf32>
    %363 = arith.select %349, %362, %360 : vector<8x8xi1>, vector<8x8xf32>
    %364 = vector.extract_strided_slice %356 {offsets = [2, 0], sizes = [1, 8], strides = [1, 1]} : vector<8x8xf32> to vector<1x8xf32>
    %365 = vector.extract_strided_slice %363 {offsets = [2, 0], sizes = [1, 8], strides = [1, 1]} : vector<8x8xf32> to vector<1x8xf32>
    %366 = vector.extract_strided_slice %364 {offsets = [0, 2], sizes = [1, 1], strides = [1, 1]} : vector<1x8xf32> to vector<1x1xf32>
    %cst_45 = arith.constant 1.000000e+00 : f32
    %367 = vector.broadcast %cst_45 : f32 to vector<1x1xf32>
    %368 = arith.divf %367, %366 : vector<1x1xf32>
    %369 = vector.broadcast %368 : vector<1x1xf32> to vector<1x8xf32>
    %370 = arith.mulf %364, %369 : vector<1x8xf32>
    %371 = vector.broadcast %368 : vector<1x1xf32> to vector<1x8xf32>
    %372 = arith.mulf %365, %371 : vector<1x8xf32>
    %373 = vector.extract_strided_slice %356 {offsets = [0, 2], sizes = [8, 1], strides = [1, 1]} : vector<8x8xf32> to vector<8x1xf32>
    %c2_i32_46 = arith.constant 2 : i32
    %374 = vector.broadcast %c2_i32_46 : i32 to vector<8x8xi32>
    %375 = arith.cmpi eq, %24, %374 : vector<8x8xi32>
    %376 = vector.broadcast %373 : vector<8x1xf32> to vector<8x8xf32>
    %377 = vector.broadcast %370 : vector<1x8xf32> to vector<8x8xf32>
    %378 = arith.mulf %376, %377 : vector<8x8xf32>
    %379 = arith.subf %356, %378 : vector<8x8xf32>
    %380 = vector.shape_cast %370 : vector<1x8xf32> to vector<1x8xf32>
    %381 = vector.broadcast %380 : vector<1x8xf32> to vector<8x8xf32>
    %382 = arith.select %375, %381, %379 : vector<8x8xi1>, vector<8x8xf32>
    %383 = vector.broadcast %373 : vector<8x1xf32> to vector<8x8xf32>
    %384 = vector.broadcast %372 : vector<1x8xf32> to vector<8x8xf32>
    %385 = arith.mulf %383, %384 : vector<8x8xf32>
    %386 = arith.subf %363, %385 : vector<8x8xf32>
    %387 = vector.shape_cast %372 : vector<1x8xf32> to vector<1x8xf32>
    %388 = vector.broadcast %387 : vector<1x8xf32> to vector<8x8xf32>
    %389 = arith.select %375, %388, %386 : vector<8x8xi1>, vector<8x8xf32>
    %390 = vector.extract_strided_slice %382 {offsets = [3, 0], sizes = [1, 8], strides = [1, 1]} : vector<8x8xf32> to vector<1x8xf32>
    %391 = vector.extract_strided_slice %389 {offsets = [3, 0], sizes = [1, 8], strides = [1, 1]} : vector<8x8xf32> to vector<1x8xf32>
    %392 = vector.extract_strided_slice %390 {offsets = [0, 3], sizes = [1, 1], strides = [1, 1]} : vector<1x8xf32> to vector<1x1xf32>
    %cst_47 = arith.constant 1.000000e+00 : f32
    %393 = vector.broadcast %cst_47 : f32 to vector<1x1xf32>
    %394 = arith.divf %393, %392 : vector<1x1xf32>
    %395 = vector.broadcast %394 : vector<1x1xf32> to vector<1x8xf32>
    %396 = arith.mulf %390, %395 : vector<1x8xf32>
    %397 = vector.broadcast %394 : vector<1x1xf32> to vector<1x8xf32>
    %398 = arith.mulf %391, %397 : vector<1x8xf32>
    %399 = vector.extract_strided_slice %382 {offsets = [0, 3], sizes = [8, 1], strides = [1, 1]} : vector<8x8xf32> to vector<8x1xf32>
    %c3_i32_48 = arith.constant 3 : i32
    %400 = vector.broadcast %c3_i32_48 : i32 to vector<8x8xi32>
    %401 = arith.cmpi eq, %24, %400 : vector<8x8xi32>
    %402 = vector.broadcast %399 : vector<8x1xf32> to vector<8x8xf32>
    %403 = vector.broadcast %396 : vector<1x8xf32> to vector<8x8xf32>
    %404 = arith.mulf %402, %403 : vector<8x8xf32>
    %405 = arith.subf %382, %404 : vector<8x8xf32>
    %406 = vector.shape_cast %396 : vector<1x8xf32> to vector<1x8xf32>
    %407 = vector.broadcast %406 : vector<1x8xf32> to vector<8x8xf32>
    %408 = arith.select %401, %407, %405 : vector<8x8xi1>, vector<8x8xf32>
    %409 = vector.broadcast %399 : vector<8x1xf32> to vector<8x8xf32>
    %410 = vector.broadcast %398 : vector<1x8xf32> to vector<8x8xf32>
    %411 = arith.mulf %409, %410 : vector<8x8xf32>
    %412 = arith.subf %389, %411 : vector<8x8xf32>
    %413 = vector.shape_cast %398 : vector<1x8xf32> to vector<1x8xf32>
    %414 = vector.broadcast %413 : vector<1x8xf32> to vector<8x8xf32>
    %415 = arith.select %401, %414, %412 : vector<8x8xi1>, vector<8x8xf32>
    %416 = vector.extract_strided_slice %408 {offsets = [4, 0], sizes = [1, 8], strides = [1, 1]} : vector<8x8xf32> to vector<1x8xf32>
    %417 = vector.extract_strided_slice %415 {offsets = [4, 0], sizes = [1, 8], strides = [1, 1]} : vector<8x8xf32> to vector<1x8xf32>
    %418 = vector.extract_strided_slice %416 {offsets = [0, 4], sizes = [1, 1], strides = [1, 1]} : vector<1x8xf32> to vector<1x1xf32>
    %cst_49 = arith.constant 1.000000e+00 : f32
    %419 = vector.broadcast %cst_49 : f32 to vector<1x1xf32>
    %420 = arith.divf %419, %418 : vector<1x1xf32>
    %421 = vector.broadcast %420 : vector<1x1xf32> to vector<1x8xf32>
    %422 = arith.mulf %416, %421 : vector<1x8xf32>
    %423 = vector.broadcast %420 : vector<1x1xf32> to vector<1x8xf32>
    %424 = arith.mulf %417, %423 : vector<1x8xf32>
    %425 = vector.extract_strided_slice %408 {offsets = [0, 4], sizes = [8, 1], strides = [1, 1]} : vector<8x8xf32> to vector<8x1xf32>
    %c4_i32_50 = arith.constant 4 : i32
    %426 = vector.broadcast %c4_i32_50 : i32 to vector<8x8xi32>
    %427 = arith.cmpi eq, %24, %426 : vector<8x8xi32>
    %428 = vector.broadcast %425 : vector<8x1xf32> to vector<8x8xf32>
    %429 = vector.broadcast %422 : vector<1x8xf32> to vector<8x8xf32>
    %430 = arith.mulf %428, %429 : vector<8x8xf32>
    %431 = arith.subf %408, %430 : vector<8x8xf32>
    %432 = vector.shape_cast %422 : vector<1x8xf32> to vector<1x8xf32>
    %433 = vector.broadcast %432 : vector<1x8xf32> to vector<8x8xf32>
    %434 = arith.select %427, %433, %431 : vector<8x8xi1>, vector<8x8xf32>
    %435 = vector.broadcast %425 : vector<8x1xf32> to vector<8x8xf32>
    %436 = vector.broadcast %424 : vector<1x8xf32> to vector<8x8xf32>
    %437 = arith.mulf %435, %436 : vector<8x8xf32>
    %438 = arith.subf %415, %437 : vector<8x8xf32>
    %439 = vector.shape_cast %424 : vector<1x8xf32> to vector<1x8xf32>
    %440 = vector.broadcast %439 : vector<1x8xf32> to vector<8x8xf32>
    %441 = arith.select %427, %440, %438 : vector<8x8xi1>, vector<8x8xf32>
    %442 = vector.extract_strided_slice %434 {offsets = [5, 0], sizes = [1, 8], strides = [1, 1]} : vector<8x8xf32> to vector<1x8xf32>
    %443 = vector.extract_strided_slice %441 {offsets = [5, 0], sizes = [1, 8], strides = [1, 1]} : vector<8x8xf32> to vector<1x8xf32>
    %444 = vector.extract_strided_slice %442 {offsets = [0, 5], sizes = [1, 1], strides = [1, 1]} : vector<1x8xf32> to vector<1x1xf32>
    %cst_51 = arith.constant 1.000000e+00 : f32
    %445 = vector.broadcast %cst_51 : f32 to vector<1x1xf32>
    %446 = arith.divf %445, %444 : vector<1x1xf32>
    %447 = vector.broadcast %446 : vector<1x1xf32> to vector<1x8xf32>
    %448 = arith.mulf %442, %447 : vector<1x8xf32>
    %449 = vector.broadcast %446 : vector<1x1xf32> to vector<1x8xf32>
    %450 = arith.mulf %443, %449 : vector<1x8xf32>
    %451 = vector.extract_strided_slice %434 {offsets = [0, 5], sizes = [8, 1], strides = [1, 1]} : vector<8x8xf32> to vector<8x1xf32>
    %c5_i32_52 = arith.constant 5 : i32
    %452 = vector.broadcast %c5_i32_52 : i32 to vector<8x8xi32>
    %453 = arith.cmpi eq, %24, %452 : vector<8x8xi32>
    %454 = vector.broadcast %451 : vector<8x1xf32> to vector<8x8xf32>
    %455 = vector.broadcast %448 : vector<1x8xf32> to vector<8x8xf32>
    %456 = arith.mulf %454, %455 : vector<8x8xf32>
    %457 = arith.subf %434, %456 : vector<8x8xf32>
    %458 = vector.shape_cast %448 : vector<1x8xf32> to vector<1x8xf32>
    %459 = vector.broadcast %458 : vector<1x8xf32> to vector<8x8xf32>
    %460 = arith.select %453, %459, %457 : vector<8x8xi1>, vector<8x8xf32>
    %461 = vector.broadcast %451 : vector<8x1xf32> to vector<8x8xf32>
    %462 = vector.broadcast %450 : vector<1x8xf32> to vector<8x8xf32>
    %463 = arith.mulf %461, %462 : vector<8x8xf32>
    %464 = arith.subf %441, %463 : vector<8x8xf32>
    %465 = vector.shape_cast %450 : vector<1x8xf32> to vector<1x8xf32>
    %466 = vector.broadcast %465 : vector<1x8xf32> to vector<8x8xf32>
    %467 = arith.select %453, %466, %464 : vector<8x8xi1>, vector<8x8xf32>
    %468 = vector.extract_strided_slice %460 {offsets = [6, 0], sizes = [1, 8], strides = [1, 1]} : vector<8x8xf32> to vector<1x8xf32>
    %469 = vector.extract_strided_slice %467 {offsets = [6, 0], sizes = [1, 8], strides = [1, 1]} : vector<8x8xf32> to vector<1x8xf32>
    %470 = vector.extract_strided_slice %468 {offsets = [0, 6], sizes = [1, 1], strides = [1, 1]} : vector<1x8xf32> to vector<1x1xf32>
    %cst_53 = arith.constant 1.000000e+00 : f32
    %471 = vector.broadcast %cst_53 : f32 to vector<1x1xf32>
    %472 = arith.divf %471, %470 : vector<1x1xf32>
    %473 = vector.broadcast %472 : vector<1x1xf32> to vector<1x8xf32>
    %474 = arith.mulf %468, %473 : vector<1x8xf32>
    %475 = vector.broadcast %472 : vector<1x1xf32> to vector<1x8xf32>
    %476 = arith.mulf %469, %475 : vector<1x8xf32>
    %477 = vector.extract_strided_slice %460 {offsets = [0, 6], sizes = [8, 1], strides = [1, 1]} : vector<8x8xf32> to vector<8x1xf32>
    %c6_i32_54 = arith.constant 6 : i32
    %478 = vector.broadcast %c6_i32_54 : i32 to vector<8x8xi32>
    %479 = arith.cmpi eq, %24, %478 : vector<8x8xi32>
    %480 = vector.broadcast %477 : vector<8x1xf32> to vector<8x8xf32>
    %481 = vector.broadcast %474 : vector<1x8xf32> to vector<8x8xf32>
    %482 = arith.mulf %480, %481 : vector<8x8xf32>
    %483 = arith.subf %460, %482 : vector<8x8xf32>
    %484 = vector.shape_cast %474 : vector<1x8xf32> to vector<1x8xf32>
    %485 = vector.broadcast %484 : vector<1x8xf32> to vector<8x8xf32>
    %486 = arith.select %479, %485, %483 : vector<8x8xi1>, vector<8x8xf32>
    %487 = vector.broadcast %477 : vector<8x1xf32> to vector<8x8xf32>
    %488 = vector.broadcast %476 : vector<1x8xf32> to vector<8x8xf32>
    %489 = arith.mulf %487, %488 : vector<8x8xf32>
    %490 = arith.subf %467, %489 : vector<8x8xf32>
    %491 = vector.shape_cast %476 : vector<1x8xf32> to vector<1x8xf32>
    %492 = vector.broadcast %491 : vector<1x8xf32> to vector<8x8xf32>
    %493 = arith.select %479, %492, %490 : vector<8x8xi1>, vector<8x8xf32>
    %494 = vector.extract_strided_slice %486 {offsets = [7, 0], sizes = [1, 8], strides = [1, 1]} : vector<8x8xf32> to vector<1x8xf32>
    %495 = vector.extract_strided_slice %493 {offsets = [7, 0], sizes = [1, 8], strides = [1, 1]} : vector<8x8xf32> to vector<1x8xf32>
    %496 = vector.extract_strided_slice %494 {offsets = [0, 7], sizes = [1, 1], strides = [1, 1]} : vector<1x8xf32> to vector<1x1xf32>
    %cst_55 = arith.constant 1.000000e+00 : f32
    %497 = vector.broadcast %cst_55 : f32 to vector<1x1xf32>
    %498 = arith.divf %497, %496 : vector<1x1xf32>
    %499 = vector.broadcast %498 : vector<1x1xf32> to vector<1x8xf32>
    %500 = arith.mulf %495, %499 : vector<1x8xf32>
    %501 = vector.extract_strided_slice %486 {offsets = [0, 7], sizes = [8, 1], strides = [1, 1]} : vector<8x8xf32> to vector<8x1xf32>
    %c7_i32_56 = arith.constant 7 : i32
    %502 = vector.broadcast %c7_i32_56 : i32 to vector<8x8xi32>
    %503 = arith.cmpi eq, %24, %502 : vector<8x8xi32>
    %504 = vector.broadcast %501 : vector<8x1xf32> to vector<8x8xf32>
    %505 = vector.broadcast %500 : vector<1x8xf32> to vector<8x8xf32>
    %506 = arith.mulf %504, %505 : vector<8x8xf32>
    %507 = arith.subf %493, %506 : vector<8x8xf32>
    %508 = vector.shape_cast %500 : vector<1x8xf32> to vector<1x8xf32>
    %509 = vector.broadcast %508 : vector<1x8xf32> to vector<8x8xf32>
    %510 = arith.select %503, %509, %507 : vector<8x8xi1>, vector<8x8xf32>
    %cst_57 = arith.constant 0.000000e+00 : f32
    %511 = vector.broadcast %cst_57 : f32 to vector<8x8xf32>
    %512 = arith.select %26, %510, %511 : vector<8x8xi1>, vector<8x8xf32>
    %cst_58 = arith.constant dense<0.000000e+00> : vector<8xf32>
    %513 = vector.multi_reduction <add>, %512, %cst_58 [1] : vector<8x8xf32> to vector<8xf32>
    %514 = vector.shape_cast %513 : vector<8xf32> to vector<8x1xf32>
    %515 = vector.shape_cast %291 : vector<1x8xf32> to vector<1x8xf32>
    %516 = vector.broadcast %515 : vector<1x8xf32> to vector<8x8xf32>
    %cst_59 = arith.constant 0.000000e+00 : f32
    %517 = vector.broadcast %cst_59 : f32 to vector<8x8xf32>
    %518 = arith.select %27, %516, %517 : vector<8x8xi1>, vector<8x8xf32>
    %519 = vector.broadcast %514 : vector<8x1xf32> to vector<8x8xf32>
    %520 = arith.mulf %518, %519 : vector<8x8xf32>
    %cst_60 = arith.constant 0.000000e+00 : f32
    %521 = vector.broadcast %cst_60 : f32 to vector<8x8xf32>
    %522 = arith.select %31, %520, %521 : vector<8x8xi1>, vector<8x8xf32>
    %523 = arith.mulf %518, %510 : vector<8x8xf32>
    %cst_61 = arith.constant 0.000000e+00 : f32
    %524 = vector.broadcast %cst_61 : f32 to vector<8x8xf32>
    %525 = arith.select %33, %523, %524 : vector<8x8xi1>, vector<8x8xf32>
    %526 = arith.subf %522, %525 : vector<8x8xf32>
    %cst_62 = arith.constant dense<0.000000e+00> : vector<8xf32>
    %527 = vector.multi_reduction <add>, %526, %cst_62 [1] : vector<8x8xf32> to vector<8xf32>
    %528 = vector.shape_cast %527 : vector<8xf32> to vector<8x1xf32>
    %cst_63 = arith.constant 1.000000e+00 : f32
    %529 = vector.broadcast %cst_63 : f32 to vector<8x1xf32>
    %530 = arith.addf %528, %529 : vector<8x1xf32>
    %531 = tpu.concatenate %283, %530 in 0 : vector<8x1xf32>, vector<8x1xf32> -> vector<16x1xf32>
    %532 = tpu.reciprocal %531 {approx = true} : vector<16x1xf32> -> vector<16x1xf32>
    %533 = vector.extract_strided_slice %0 {offsets = [0, 0], sizes = [8, 32], strides = [1, 1]} : vector<16x32xf32> to vector<8x32xf32>
    %cst_64 = arith.constant dense<0.000000e+00> : vector<8x32xf32>
    %534 = tpu.matmul %279, %533, %cst_64 {dimension_numbers = #tpu.dot_dimension_numbers<[1], [0], [0], [1], [0, 0, 1, 1], [], []>} : vector<8x8xf32>, vector<8x32xf32>, vector<8x32xf32> -> vector<8x32xf32>
    %535 = vector.extract_strided_slice %0 {offsets = [8, 0], sizes = [8, 32], strides = [1, 1]} : vector<16x32xf32> to vector<8x32xf32>
    %cst_65 = arith.constant dense<0.000000e+00> : vector<8x32xf32>
    %536 = tpu.matmul %526, %535, %cst_65 {dimension_numbers = #tpu.dot_dimension_numbers<[1], [0], [0], [1], [0, 0, 1, 1], [], []>} : vector<8x8xf32>, vector<8x32xf32>, vector<8x32xf32> -> vector<8x32xf32>
    %537 = tpu.concatenate %534, %536 in 0 : vector<8x32xf32>, vector<8x32xf32> -> vector<16x32xf32>
    %c48 = arith.constant 48 : index
    %c0_66 = arith.constant 0 : index
    %538 = vector.load %arg2[%c48, %c0_66] : memref<184x32xf32, #tpu.memory_space<vmem>>, vector<32x16xf32>
    %c80 = arith.constant 80 : index
    %c0_67 = arith.constant 0 : index
    %539 = vector.load %arg2[%c80, %c0_67] : memref<184x32xf32, #tpu.memory_space<vmem>>, vector<1x16xf32>
    %540 = arith.addf %537, %0 : vector<16x32xf32>
    %cst_68 = arith.constant dense<0.000000e+00> : vector<16x16xf32>
    %541 = tpu.matmul %540, %538, %cst_68 {dimension_numbers = #tpu.dot_dimension_numbers<[1], [0], [0], [1], [0, 0, 1, 1], [], []>} : vector<16x32xf32>, vector<32x16xf32>, vector<16x16xf32> -> vector<16x16xf32>
    %cst_69 = arith.constant 2.000000e+00 : f32
    %542 = vector.broadcast %cst_69 : f32 to vector<1x16xf32>
    %543 = arith.mulf %542, %539 : vector<1x16xf32>
    %544 = vector.broadcast %543 : vector<1x16xf32> to vector<16x16xf32>
    %545 = arith.addf %541, %544 : vector<16x16xf32>
    %546 = vector.broadcast %532 : vector<16x1xf32> to vector<16x16xf32>
    %547 = arith.mulf %545, %546 : vector<16x16xf32>
    %cst_70 = arith.constant 0.000000e+00 : f32
    %548 = vector.broadcast %cst_70 : f32 to vector<16x16xf32>
    %549 = arith.maximumf %547, %548 : vector<16x16xf32>
    %550 = tpu.concatenate %0, %549 in 1 : vector<16x32xf32>, vector<16x16xf32> -> vector<16x48xf32>
    %551 = vector.extract_strided_slice %549 {offsets = [0, 0], sizes = [8, 16], strides = [1, 1]} : vector<16x16xf32> to vector<8x16xf32>
    %cst_71 = arith.constant dense<0.000000e+00> : vector<8x16xf32>
    %552 = tpu.matmul %279, %551, %cst_71 {dimension_numbers = #tpu.dot_dimension_numbers<[1], [0], [0], [1], [0, 0, 1, 1], [], []>} : vector<8x8xf32>, vector<8x16xf32>, vector<8x16xf32> -> vector<8x16xf32>
    %553 = vector.extract_strided_slice %549 {offsets = [8, 0], sizes = [8, 16], strides = [1, 1]} : vector<16x16xf32> to vector<8x16xf32>
    %cst_72 = arith.constant dense<0.000000e+00> : vector<8x16xf32>
    %554 = tpu.matmul %526, %553, %cst_72 {dimension_numbers = #tpu.dot_dimension_numbers<[1], [0], [0], [1], [0, 0, 1, 1], [], []>} : vector<8x8xf32>, vector<8x16xf32>, vector<8x16xf32> -> vector<8x16xf32>
    %555 = tpu.concatenate %552, %554 in 0 : vector<8x16xf32>, vector<8x16xf32> -> vector<16x16xf32>
    %556 = tpu.concatenate %537, %555 in 1 : vector<16x32xf32>, vector<16x16xf32> -> vector<16x48xf32>
    %c88 = arith.constant 88 : index
    %c0_73 = arith.constant 0 : index
    %557 = vector.load %arg2[%c88, %c0_73] : memref<184x32xf32, #tpu.memory_space<vmem>>, vector<48x16xf32>
    %c136 = arith.constant 136 : index
    %c0_74 = arith.constant 0 : index
    %558 = vector.load %arg2[%c136, %c0_74] : memref<184x32xf32, #tpu.memory_space<vmem>>, vector<1x16xf32>
    %559 = arith.addf %556, %550 : vector<16x48xf32>
    %cst_75 = arith.constant dense<0.000000e+00> : vector<16x16xf32>
    %560 = tpu.matmul %559, %557, %cst_75 {dimension_numbers = #tpu.dot_dimension_numbers<[1], [0], [0], [1], [0, 0, 1, 1], [], []>} : vector<16x48xf32>, vector<48x16xf32>, vector<16x16xf32> -> vector<16x16xf32>
    %cst_76 = arith.constant 2.000000e+00 : f32
    %561 = vector.broadcast %cst_76 : f32 to vector<1x16xf32>
    %562 = arith.mulf %561, %558 : vector<1x16xf32>
    %563 = vector.broadcast %562 : vector<1x16xf32> to vector<16x16xf32>
    %564 = arith.addf %560, %563 : vector<16x16xf32>
    %565 = vector.broadcast %532 : vector<16x1xf32> to vector<16x16xf32>
    %566 = arith.mulf %564, %565 : vector<16x16xf32>
    %cst_77 = arith.constant 0.000000e+00 : f32
    %567 = vector.broadcast %cst_77 : f32 to vector<16x16xf32>
    %568 = arith.maximumf %566, %567 : vector<16x16xf32>
    %569 = tpu.concatenate %549, %568 in 1 : vector<16x16xf32>, vector<16x16xf32> -> vector<16x32xf32>
    %570 = arith.addf %569, %0 : vector<16x32xf32>
    %c144 = arith.constant 144 : index
    %c0_78 = arith.constant 0 : index
    %571 = vector.load %arg2[%c144, %c0_78] : memref<184x32xf32, #tpu.memory_space<vmem>>, vector<32x32xf32>
    %cst_79 = arith.constant dense<0.000000e+00> : vector<16x32xf32>
    %572 = tpu.matmul %570, %571, %cst_79 {dimension_numbers = #tpu.dot_dimension_numbers<[1], [0], [0], [1], [0, 0, 1, 1], [], []>} : vector<16x32xf32>, vector<32x32xf32>, vector<16x32xf32> -> vector<16x32xf32>
    %c176 = arith.constant 176 : index
    %c0_80 = arith.constant 0 : index
    %573 = vector.load %arg2[%c176, %c0_80] : memref<184x32xf32, #tpu.memory_space<vmem>>, vector<1x32xf32>
    %574 = vector.broadcast %573 : vector<1x32xf32> to vector<16x32xf32>
    %575 = arith.addf %572, %574 : vector<16x32xf32>
    %c0_81 = arith.constant 0 : index
    %c0_82 = arith.constant 0 : index
    %576 = vector.load %arg3[%c0_81, %c0_82] : memref<16x32xf32, #tpu.memory_space<vmem>>, vector<16x32xf32>
    tpu.vector_store %arg3[%c0_81, %c0_82], %575 {strides = array<i32>} : memref<16x32xf32, #tpu.memory_space<vmem>>, vector<16x32xf32>,
    return
  }
  func.func @transform_0(%arg0: i32) -> (i32, i32) {
    %c0_i32 = arith.constant 0 : i32
    %c0_i32_0 = arith.constant 0 : i32
    return %arg0, %c0_i32 : i32, i32
  }
  func.func @transform_1(%arg0: i32) -> (i32, i32) {
    %c0_i32 = arith.constant 0 : i32
    %c0_i32_0 = arith.constant 0 : i32
    %c0_i32_1 = arith.constant 0 : i32
    return %c0_i32, %c0_i32_0 : i32, i32
  }
  func.func @transform_2(%arg0: i32) -> (i32, i32) {
    %c0_i32 = arith.constant 0 : i32
    %c0_i32_0 = arith.constant 0 : i32
    return %arg0, %c0_i32 : i32, i32
  }
}

</mosaic_0001>

<bundles_post_ra>
// kernel: tpu_custom_call.1
= control target key start
LH: loop header
LB: loop body
LE: loop exit
PB: predicated region body
PF: predicated region fallthrough
CT: control target
= control target key end

     0   :  { %s1673_s15 = smov 120   ;;  %s1965_s0 = inlined_call_operand.vmem [shape: f32[16,32], index: 0, kind: input, shape index: {}]   ;;  %s1966_s1 = inlined_call_operand.vmem [shape: f32[184,32], index: 1, kind: input, shape index: {}]   ;;  %s1967_s2 = inlined_call_operand.hbm [shape: f32[16,32], index: 2, kind: output, shape index: {}]  }
   0x1   :  { %v1708_v0 = vld [vmem:[%s1965_s0 + $0x8] sm:$0xff]  ;;  %v1713_v1 = vld [vmem:[%s1965_s0] sm:$0xff] }
   0x2   :  { %v31_v2 = vld [vmem:[%s1966_s1] sm:$0xff]  ;;  %18 = vrot.lane.b32.xlu1 %v1708_v0, %s1673_s15  ;;  %16 = vrot.lane.b32.xlu0 %v1713_v1, %s1673_s15  ;;  %v32_v3 = vld [vmem:[%s1966_s1 + $0x8] sm:$0xff] }
   0x3   :  { %v1529_v4 = vpack.c.bf16 %v32_v3, %v31_v2 }
   0x4   :  { %7 = vsyncpa [#allocation3], 0  ;;  %s1674_s18 = smov 112   ;;  %vm28_vm0 = vcmask 64512   ;;  %v1410_v7 = vld [vmem:[%s1966_s1 + $0x18] ss:$0 sm:$0xff]  ;;  %v240_v38 = vlaneseq }
   0x5   :  { %1530 = vmatprep.subr.bf16.mxu0 %v1529_v4  ;;  %vm41_vm1 = vcmask 130048   ;;  %v35_v13 = vld [vmem:[%s1966_s1 + $0x20] sm:$0xff]  ;;  %v36_v14 = vld [vmem:[%s1966_s1 + $0x28] sm:$0xff]  ;;  %v1405_v16 = vld [vmem:[%s1966_s1 + $0x10] ss:$0 sm:$0xff]  ;;  %v1675_v34 = vmov 0  }
   0x6   :  { %24 = vrot.lane.b32.xlu1 %v1708_v0, %s1674_s18  ;;  %22 = vrot.lane.b32.xlu0 %v1713_v1, %s1674_s18  ;;  %v1533_v15 = vpack.c.bf16 %v36_v14, %v35_v13  ;;  %v1676_v35 = vmov 0.0   ;;  %v1758_v39 = vshrl.u32 %v240_v38, 7  ;;  %v1760_v40 = vand.u32 127, %v240_v38  ;;  %s1685_s9 = smov 32   ;;  %s1686_s7 = smov 16  }
   0x7   :  { %1532 = vmatpush3.bf16.msra.mxu0 %v1529_v4  ;;  %1583 = vset.pattern.permute.xlu1 %v1675_v34  ;;  %vm1684_vm12 = vmmov 0   ;;  %vm929_vm15 = vcmask 261120   ;;  %s1687_s10 = smov [#allocation2]  }
   0x8   :  { %1534 = vmatprep.subr.bf16.mxu1 %v1533_v15  ;;  %1582 = vset.pattern.permute.xlu0 %v1675_v34  ;;  %vm1764_vm2 = vcmp.eq.s32.totalorder %v1758_v39, %v1760_v40  ;;  %vm246_vm3 = vcmp.eq.s32.totalorder %v1758_v39, 0  ;;  %vm313_vm4 = vcmp.eq.s32.totalorder %v1758_v39, 1  ;;  %vm342_vm5 = vcmp.eq.s32.totalorder %v1758_v39, 2  ;;  %s1394_s11 = sshll.u32 %s1687_s10, 4  ;;  %s1395_s11 = int_to_ptr.vmem [resolvable:$true] %s1394_s11 }
   0x9   :  { %1536 = vmatpush3.bf16.msra.mxu1 %v1533_v15  ;;  %1472 = vmatprep.subr.mxu0 %v1676_v35  ;;  %vm371_vm6 = vcmp.eq.s32.totalorder %v1758_v39, 3  ;;  %vm400_vm7 = vcmp.eq.s32.totalorder %v1758_v39, 4  ;;  %vm429_vm8 = vcmp.eq.s32.totalorder %v1758_v39, 5  ;;  %vm458_vm9 = vcmp.eq.s32.totalorder %v1758_v39, 6  ;;  %s1649_s12 = scalar_lea.vmem %s1395_s11, 256  ;;  %p1654_p1 = scmp.lt.s32.totalorder %s1395_s11, %s1395_s11 }
   0xa   :  { %1477 = vmatprep.subr.mxu1 %v1676_v35  ;;  %vm486_vm10 = vcmp.eq.s32.totalorder %v1758_v39, 7  ;;  %vm245_vm11 = vcmp.ne.s32.totalorder %v1758_v39, %v1760_v40  ;;  %vm247_vm13 = vcmp.gt.s32.totalorder %v1758_v39, 0  ;;  %vm248_vm14 = vcmp.gt.s32.totalorder %v1760_v40, 0  ;;  %v917_v40 = vld [vmem:[%s1966_s1 + $0x30] sm:$0xff]  ;;  %p1650_p0 = scmp.ne.s32.totalorder %s1395_s11, %s1649_s12  ;;  %p1655_p2 = scmp.lt.s32.totalorder %s1649_s12, %s1649_s12 }
   0xc   :  { %p1656_p3 = por %p1655_p2, %p1654_p1 }
   0xe   :  { %p1657_p4 = pnand %p1656_p3, %p1650_p0 }
  0x74   :  { %v19_v5 = vpop.permute.xlu1 %18  ;;  %v17_v6 = vpop.permute.xlu0 %16 }
  0x78   :  { %v25_v8 = vpop.permute.xlu1 %24  ;;  %v23_v9 = vpop.permute.xlu0 %22 }
  0x79   :  { %v30_v10 = vsel %vm28_vm0, %v19_v5, %v25_v8  ;;  %v29_v11 = vsel %vm28_vm0, %v17_v6, %v23_v9 }
  0x7a   :  { %1462 = vmatprep.mubr.msk.f32.mxu0 %vm41_vm1, %v29_v11  ;;  %v229_v12 = vmul.f32 %v1410_v7, %v30_v10  ;;  %v228_v23 = vmul.f32 %v1410_v7, %v29_v11 }
  0x7b   :  { %1463 = vmatmul.mubr.msk.f32.vlgmr.msra.gmra.mrb[0].mxu0 %vm41_vm1, %v30_v10 }
  0x7c   :  { %v230_v24 = vsel %vm41_vm1, %v228_v23, 0.0  ;;  %v233_v33 = vsel %vm41_vm1, %v229_v12, 0.0  ;;  %1473 = vmatpush3.msra.mxu0 %v1713_v1  ;;  %1474 = vmatprep.mubr.msk.f32.mxu0 %vm1684_vm12, %v1676_v35 }
 0x14e   :  { %v1464_v17 = vpop.f32.mrb[0].mxu0 }
 0x14f   :  { %v120_v18 = vadd.f32 %v1464_v17, %v1405_v16  ;;  %v114_v19 = vpop.f32.mrb[1].mxu0 }
 0x150   :  { %v115_v20 = vadd.f32 %v1405_v16, %v114_v19 }
 0x151   :  { %1599 = vtanh.f32 %v120_v18 }
 0x152   :  { %1601 = vtanh.f32 %v115_v20 }
 0x15b   :  { %v1600_v21 = vpop.eup %1599 }
 0x15c   :  { %v1602_v22 = vpop.eup %1601  ;;  %208 = vrot.lane.b32.xlu1 %v1600_v21, %s1674_s18 }
 0x15d   :  { %206 = vrot.lane.b32.xlu0 %v1602_v22, %s1674_s18  ;;  %1469 = vmatprep.mubr.msk.f32.mxu1 %vm41_vm1, %v1602_v22 }
 0x15e   :  { %1470 = vmatmul.mubr.msk.f32.vlgmr.msra.gmra.mrb[0].mxu1 %vm41_vm1, %v1600_v21 }
 0x15f   :  { %1478 = vmatpush3.msra.mxu1 %v1708_v0  ;;  %1479 = vmatprep.mubr.msk.f32.mxu1 %vm1684_vm12, %v1676_v35 }
 0x160   :  { %1493 = vmatprep.subr.mxu1 %v1676_v35 }
 0x17c   :  { %231 = vadd.xlane.f32.xlu0 %v230_v24 }
 0x1ce   :  { %v209_v25 = vpop.permute.xlu1 %208 }
 0x1cf   :  { %v207_v27 = vpop.permute.xlu0 %206 }
 0x209   :  { %v232_v36 = vpop.xlane.xlu0 %231 }
 0x20a   :  { %v236_v37 = vmul.f32 1.442695, %v232_v36 }
 0x20c   :  { %1603 = vpow2.f32 %v236_v37 }
 0x216   :  { %v1604_v41 = vpop.eup %1603 }
 0x217   :  { %v258_v46 = vsel %vm1764_vm2, %v1604_v41, 0.0 }
 0x218   :  { %v259_v48 = vsel %vm28_vm0, %v258_v46, 0.0 }
 0x219   :  { %v260_v51 = vrot.slane %v259_v48, 4 }
 0x21b   :  { %v261_v52 = vadd.f32 %v260_v51, %v259_v48 }
 0x21d   :  { %v262_v57 = vrot.slane %v261_v52, 2 }
 0x21f   :  { %v263_v2 = vadd.f32 %v262_v57, %v261_v52 }
 0x221   :  { %v264_v10 = vrot.slane %v263_v2, 1 }
 0x223   :  { %v265_v17 = vadd.f32 %v264_v10, %v263_v2  ;;  %v321_v2 = vsub.s32 1, %v1758_v39 }
 0x231   :  { %v1471_v26 = vpop.f32.mrb[0].mxu1 }
 0x232   :  { %v213_v28 = vmul.f32 %v1471_v26, %v209_v25  ;;  %v197_v29 = vpop.f32.mrb[1].mxu1 }
 0x233   :  { %v212_v30 = vmul.f32 %v207_v27, %v197_v29  ;;  %v249_v29 = vsel %vm1764_vm2, 1.0, %v1676_v35 }
 0x234   :  { %v217_v31 = vsel %vm41_vm1, %v213_v28, 0.0  ;;  %v1677_v28 = vmov 1  }
 0x235   :  { %218 = vadd.xlane.f32.xlu1 %v217_v31  ;;  %v214_v32 = vsel %vm41_vm1, %v212_v30, 0.0  ;;  %v1799_v30 = vsub.s32 0, %v1758_v39 }
 0x236   :  { %215 = vadd.xlane.f32.xlu0 %v214_v32 }
 0x23a   :  { %234 = vadd.xlane.f32.xlu0 %v233_v33 }
 0x2c2   :  { %v219_v43 = vpop.xlane.xlu1 %218 }
 0x2c3   :  { %v222_v44 = vmul.f32 1.442695, %v219_v43  ;;  %v216_v45 = vpop.xlane.xlu0 %215 }
 0x2c4   :  { %v220_v47 = vmul.f32 1.442695, %v216_v45 }
 0x2c5   :  { %1605 = vpow2.f32 %v222_v44 }
 0x2c6   :  { %1607 = vpow2.f32 %v220_v47 }
 0x2c7   :  { %v235_v49 = vpop.xlane.xlu0 %234 }
 0x2c8   :  { %v238_v50 = vmul.f32 1.442695, %v235_v49 }
 0x2ca   :  { %1609 = vpow2.f32 %v238_v50 }
 0x2cf   :  { %v1771_v53 = vpop.eup %1605 }
 0x2d0   :  { %v1773_v54 = vpop.eup %1607  ;;  %v529_v55 = vrot.slane %v1771_v53, 4  ;;  %v536_v21 = vsub.f32 0.0, %v1771_v53 }
 0x2d1   :  { %v266_v56 = vrot.slane %v1773_v54, 4  ;;  %v273_v16 = vsub.f32 0.0, %v1773_v54 }
 0x2d2   :  { %v530_v58 = vadd.f32 %v1771_v53, %v529_v55 }
 0x2d3   :  { %v267_v59 = vadd.f32 %v1773_v54, %v266_v56 }
 0x2d4   :  { %v1610_v60 = vpop.eup %1609  ;;  %v531_v61 = vrot.slane %v530_v58, 2 }
 0x2d5   :  { %v521_v62 = vsel %vm1764_vm2, %v1610_v60, 0.0  ;;  %v268_v63 = vrot.slane %v267_v59, 2 }
 0x2d6   :  { %v532_v3 = vadd.f32 %v531_v61, %v530_v58  ;;  %v522_v4 = vsel %vm28_vm0, %v521_v62, 0.0 }
 0x2d7   :  { %v523_v5 = vrot.slane %v522_v4, 4  ;;  %v269_v6 = vadd.f32 %v268_v63, %v267_v59  ;;  %v1678_v59 = vmov 2  }
 0x2d8   :  { %v533_v7 = vrot.slane %v532_v3, 1 }
 0x2d9   :  { %v524_v8 = vadd.f32 %v523_v5, %v522_v4  ;;  %v270_v9 = vrot.slane %v269_v6, 1 }
 0x2da   :  { %v534_v11 = vadd.f32 %v533_v7, %v532_v3 }
 0x2db   :  { %v525_v12 = vrot.slane %v524_v8, 2  ;;  %v271_v13 = vadd.f32 %v270_v9, %v269_v6 }
 0x2dc   :  { %v535_v18 = vsub.f32 %v534_v11, %v1771_v53 }
 0x2dd   :  { %v526_v14 = vadd.f32 %v525_v12, %v524_v8  ;;  %v272_v15 = vsub.f32 %v271_v13, %v1773_v54 }
 0x2de   :  { %v537_v24 = vsel %vm1764_vm2, %v535_v18, %v536_v21 }
 0x2df   :  { %v527_v19 = vrot.slane %v526_v14, 1  ;;  %v274_v20 = vsel %vm1764_vm2, %v272_v15, %v273_v16 }
 0x2e0   :  { %v275_v22 = vsel %vm246_vm3, %v265_v17, %v274_v20 }
 0x2e1   :  { %v528_v23 = vadd.f32 %v527_v19, %v526_v14  ;;  %1611 = vrcp.f32 %v275_v22 }
 0x2e3   :  { %v538_v25 = vsel %vm246_vm3, %v528_v23, %v537_v24 }
 0x2e4   :  { %1613 = vrcp.f32 %v538_v25 }
 0x2eb   :  { %v1612_v26 = vpop.eup %1611 }
 0x2ec   :  { %280 = vperm.xlu1 %1583, %v1612_v26  }
 0x2ee   :  { %v1614_v27 = vpop.eup %1613 }
 0x2ef   :  { %543 = vperm.xlu0 %1582, %v1614_v27  }
 0x2f0   :  { %287 = vperm.xlu1 %1583, %v275_v22  }
 0x2f3   :  { %1586 = vset.pattern.permute.xlu0 %v1678_v59 }
 0x2f4   :  { %550 = vperm.xlu1 %1583, %v538_v25  }
 0x2f8   :  { %1584 = vset.pattern.permute.xlu1 %v1677_v28 }
 0x36b   :  { %v281_v31 = vpop.permute.xlu1 %280 }
 0x36c   :  { %v283_v32 = vmul.f32 %v281_v31, %v275_v22  ;;  %v284_v33 = vmul.f32 %v281_v31, %v249_v29  ;;  %v1679_v31 = vmov 3  }
 0x36e   :  { %v544_v36 = vpop.permute.xlu0 %543  ;;  %v293_v37 = vrot.slane %v283_v32, %v1799_v30  ;;  %v300_v38 = vrot.slane %v284_v33, %v1799_v30  ;;  %v350_v32 = vsub.s32 2, %v1758_v39 }
 0x36f   :  { %v546_v41 = vmul.f32 %v544_v36, %v538_v25  ;;  %v288_v43 = vpop.permute.xlu1 %287  ;;  %v547_v60 = vmul.f32 %v544_v36, %v249_v29 }
 0x370   :  { %v301_v44 = vmul.f32 %v300_v38, %v288_v43  ;;  %v294_v46 = vmul.f32 %v293_v37, %v288_v43 }
 0x371   :  { %v556_v45 = vrot.slane %v546_v41, %v1799_v30  ;;  %v563_v61 = vrot.slane %v547_v60, %v1799_v30 }
 0x372   :  { %v302_v47 = vsub.f32 %v249_v29, %v301_v44  ;;  %v295_v51 = vsub.f32 %v275_v22, %v294_v46 }
 0x373   :  { %v551_v48 = vpop.permute.xlu1 %550 }
 0x374   :  { %v557_v49 = vmul.f32 %v556_v45, %v551_v48  ;;  %v303_v50 = vsel %vm246_vm3, %v300_v38, %v302_v47  ;;  %v296_v56 = vsel %vm246_vm3, %v293_v37, %v295_v51  ;;  %v564_v62 = vmul.f32 %v563_v61, %v551_v48 }
 0x376   :  { %v558_v52 = vsub.f32 %v538_v25, %v557_v49  ;;  %v565_v63 = vsub.f32 %v249_v29, %v564_v62 }
 0x378   :  { %v559_v55 = vsel %vm246_vm3, %v556_v45, %v558_v52  ;;  %v566_v3 = vsel %vm246_vm3, %v563_v61, %v565_v63 }
 0x379   :  { %1615 = vrcp.f32 %v559_v55 }
 0x37a   :  { %1617 = vrcp.f32 %v296_v56 }
 0x383   :  { %v1616_v57 = vpop.eup %1615 }
 0x384   :  { %571 = vperm.xlu1 %1584, %v1616_v57   ;;  %v1618_v58 = vpop.eup %1617 }
 0x388   :  { %308 = vperm.xlu1 %1584, %v1618_v58  }
 0x38c   :  { %316 = vperm.xlu1 %1584, %v296_v56  }
 0x390   :  { %578 = vperm.xlu1 %1584, %v559_v55  }
 0x394   :  { %1585 = vset.pattern.permute.xlu1 %v1678_v59 }
 0x403   :  { %v572_v4 = vpop.permute.xlu1 %571 }
 0x404   :  { %v575_v5 = vmul.f32 %v572_v4, %v566_v3  ;;  %v574_v10 = vmul.f32 %v572_v4, %v559_v55  ;;  %v1680_v4 = vmov 4  }
 0x406   :  { %v591_v6 = vrot.slane %v575_v5, %v321_v2  ;;  %v584_v18 = vrot.slane %v574_v10, %v321_v2  ;;  %v379_v5 = vsub.s32 3, %v1758_v39 }
 0x407   :  { %v309_v7 = vpop.permute.xlu1 %308 }
 0x408   :  { %v311_v8 = vmul.f32 %v309_v7, %v296_v56  ;;  %v312_v9 = vmul.f32 %v309_v7, %v303_v50 }
 0x40a   :  { %v322_v11 = vrot.slane %v311_v8, %v321_v2  ;;  %v329_v12 = vrot.slane %v312_v9, %v321_v2 }
 0x40b   :  { %v317_v13 = vpop.permute.xlu1 %316 }
 0x40c   :  { %v323_v14 = vmul.f32 %v322_v11, %v317_v13  ;;  %v330_v15 = vmul.f32 %v329_v12, %v317_v13 }
 0x40e   :  { %v324_v16 = vsub.f32 %v296_v56, %v323_v14  ;;  %v331_v17 = vsub.f32 %v303_v50, %v330_v15 }
 0x40f   :  { %v579_v19 = vpop.permute.xlu1 %578 }
 0x410   :  { %v585_v20 = vmul.f32 %v584_v18, %v579_v19  ;;  %v592_v21 = vmul.f32 %v591_v6, %v579_v19  ;;  %v325_v22 = vsel %vm313_vm4, %v322_v11, %v324_v16  ;;  %v332_v23 = vsel %vm313_vm4, %v329_v12, %v331_v17 }
 0x411   :  { %345 = vperm.xlu0 %1586, %v325_v22   ;;  %1619 = vrcp.f32 %v325_v22 }
 0x412   :  { %v586_v24 = vsub.f32 %v559_v55, %v585_v20  ;;  %v593_v25 = vsub.f32 %v566_v3, %v592_v21 }
 0x414   :  { %v587_v26 = vsel %vm313_vm4, %v584_v18, %v586_v24  ;;  %v594_v27 = vsel %vm313_vm4, %v591_v6, %v593_v25 }
 0x415   :  { %1621 = vrcp.f32 %v587_v26  ;;  %1587 = vset.pattern.permute.xlu0 %v1679_v31 }
 0x41b   :  { %v1620_v28 = vpop.eup %1619 }
 0x41c   :  { %337 = vperm.xlu1 %1585, %v1620_v28  }
 0x41f   :  { %v1622_v29 = vpop.eup %1621 }
 0x420   :  { %599 = vperm.xlu1 %1585, %v1622_v29  }
 0x424   :  { %606 = vperm.xlu1 %1585, %v587_v26  }
 0x428   :  { %1588 = vset.pattern.permute.xlu1 %v1679_v31 }
 0x490   :  { %v346_v43 = vpop.permute.xlu0 %345 }
 0x49b   :  { %v338_v33 = vpop.permute.xlu1 %337 }
 0x49c   :  { %v340_v36 = vmul.f32 %v338_v33, %v325_v22  ;;  %v341_v37 = vmul.f32 %v338_v33, %v332_v23  ;;  %v1681_v33 = vmov 5  }
 0x49e   :  { %v351_v38 = vrot.slane %v340_v36, %v350_v32  ;;  %v358_v41 = vrot.slane %v341_v37, %v350_v32  ;;  %v408_v36 = vsub.s32 4, %v1758_v39 }
 0x49f   :  { %v600_v44 = vpop.permute.xlu1 %599 }
 0x4a0   :  { %v352_v45 = vmul.f32 %v351_v38, %v346_v43  ;;  %v359_v46 = vmul.f32 %v358_v41, %v346_v43  ;;  %v602_v47 = vmul.f32 %v600_v44, %v587_v26  ;;  %v603_v48 = vmul.f32 %v600_v44, %v594_v27 }
 0x4a2   :  { %v353_v49 = vsub.f32 %v325_v22, %v352_v45  ;;  %v360_v50 = vsub.f32 %v332_v23, %v359_v46  ;;  %v612_v51 = vrot.slane %v602_v47, %v350_v32  ;;  %v619_v52 = vrot.slane %v603_v48, %v350_v32 }
 0x4a3   :  { %v607_v55 = vpop.permute.xlu1 %606 }
 0x4a4   :  { %v354_v56 = vsel %vm342_vm5, %v351_v38, %v353_v49  ;;  %v613_v57 = vmul.f32 %v612_v51, %v607_v55  ;;  %v620_v58 = vmul.f32 %v619_v52, %v607_v55  ;;  %v361_v59 = vsel %vm342_vm5, %v358_v41, %v360_v50 }
 0x4a5   :  { %1623 = vrcp.f32 %v354_v56 }
 0x4a6   :  { %v614_v60 = vsub.f32 %v587_v26, %v613_v57  ;;  %v621_v61 = vsub.f32 %v594_v27, %v620_v58 }
 0x4a8   :  { %v615_v62 = vsel %vm342_vm5, %v612_v51, %v614_v60  ;;  %v622_v63 = vsel %vm342_vm5, %v619_v52, %v621_v61 }
 0x4a9   :  { %1625 = vrcp.f32 %v615_v62 }
 0x4af   :  { %v1624_v2 = vpop.eup %1623 }
 0x4b0   :  { %366 = vperm.xlu1 %1588, %v1624_v2  }
 0x4b3   :  { %v1626_v3 = vpop.eup %1625 }
 0x4b4   :  { %374 = vperm.xlu1 %1588, %v354_v56   ;;  %627 = vperm.xlu0 %1587, %v1626_v3  }
 0x4b8   :  { %634 = vperm.xlu1 %1588, %v615_v62   ;;  %1589 = vset.pattern.permute.xlu0 %v1680_v4 }
 0x4bc   :  { %1590 = vset.pattern.permute.xlu1 %v1680_v4 }
 0x52f   :  { %v367_v6 = vpop.permute.xlu1 %366 }
 0x530   :  { %v369_v7 = vmul.f32 %v367_v6, %v354_v56  ;;  %v370_v8 = vmul.f32 %v367_v6, %v361_v59  ;;  %v1682_v6 = vmov 6  }
 0x532   :  { %v380_v9 = vrot.slane %v369_v7, %v379_v5  ;;  %v387_v10 = vrot.slane %v370_v8, %v379_v5  ;;  %v437_v7 = vsub.s32 5, %v1758_v39 }
 0x533   :  { %v628_v11 = vpop.permute.xlu0 %627  ;;  %v375_v12 = vpop.permute.xlu1 %374 }
 0x534   :  { %v630_v13 = vmul.f32 %v628_v11, %v615_v62  ;;  %v631_v14 = vmul.f32 %v628_v11, %v622_v63  ;;  %v381_v15 = vmul.f32 %v380_v9, %v375_v12  ;;  %v388_v16 = vmul.f32 %v387_v10, %v375_v12 }
 0x536   :  { %v382_v17 = vsub.f32 %v354_v56, %v381_v15  ;;  %v389_v18 = vsub.f32 %v361_v59, %v388_v16  ;;  %v640_v19 = vrot.slane %v630_v13, %v379_v5  ;;  %v647_v20 = vrot.slane %v631_v14, %v379_v5 }
 0x537   :  { %v635_v21 = vpop.permute.xlu1 %634 }
 0x538   :  { %v383_v22 = vsel %vm371_vm6, %v380_v9, %v382_v17  ;;  %v641_v23 = vmul.f32 %v640_v19, %v635_v21  ;;  %v648_v24 = vmul.f32 %v647_v20, %v635_v21  ;;  %v390_v25 = vsel %vm371_vm6, %v387_v10, %v389_v18 }
 0x539   :  { %1627 = vrcp.f32 %v383_v22 }
 0x53a   :  { %v642_v26 = vsub.f32 %v615_v62, %v641_v23  ;;  %v649_v27 = vsub.f32 %v622_v63, %v648_v24 }
 0x53c   :  { %v643_v28 = vsel %vm371_vm6, %v640_v19, %v642_v26  ;;  %v650_v29 = vsel %vm371_vm6, %v647_v20, %v649_v27 }
 0x53d   :  { %1629 = vrcp.f32 %v643_v28 }
 0x543   :  { %v1628_v31 = vpop.eup %1627 }
 0x544   :  { %395 = vperm.xlu0 %1589, %v1628_v31  }
 0x547   :  { %v1630_v32 = vpop.eup %1629 }
 0x548   :  { %662 = vperm.xlu0 %1589, %v643_v28   ;;  %655 = vperm.xlu1 %1590, %v1630_v32  }
 0x54c   :  { %403 = vperm.xlu1 %1590, %v383_v22   ;;  %1591 = vset.pattern.permute.xlu0 %v1681_v33 }
 0x550   :  { %1592 = vset.pattern.permute.xlu1 %v1681_v33 }
 0x5c3   :  { %v396_v37 = vpop.permute.xlu0 %395 }
 0x5c4   :  { %v399_v38 = vmul.f32 %v396_v37, %v390_v25  ;;  %v398_v41 = vmul.f32 %v396_v37, %v383_v22  ;;  %v1683_v37 = vmov 7  }
 0x5c6   :  { %v416_v43 = vrot.slane %v399_v38, %v408_v36  ;;  %v409_v49 = vrot.slane %v398_v41, %v408_v36  ;;  %v466_v38 = vsub.s32 6, %v1758_v39 }
 0x5c7   :  { %v656_v44 = vpop.permute.xlu1 %655  ;;  %v663_v50 = vpop.permute.xlu0 %662 }
 0x5c8   :  { %v658_v45 = vmul.f32 %v656_v44, %v643_v28  ;;  %v659_v46 = vmul.f32 %v656_v44, %v650_v29 }
 0x5ca   :  { %v668_v47 = vrot.slane %v658_v45, %v408_v36  ;;  %v675_v48 = vrot.slane %v659_v46, %v408_v36 }
 0x5cb   :  { %v404_v51 = vpop.permute.xlu1 %403 }
 0x5cc   :  { %v669_v52 = vmul.f32 %v668_v47, %v663_v50  ;;  %v676_v55 = vmul.f32 %v675_v48, %v663_v50  ;;  %v410_v56 = vmul.f32 %v409_v49, %v404_v51  ;;  %v417_v57 = vmul.f32 %v416_v43, %v404_v51 }
 0x5ce   :  { %v670_v58 = vsub.f32 %v643_v28, %v669_v52  ;;  %v677_v59 = vsub.f32 %v650_v29, %v676_v55  ;;  %v411_v60 = vsub.f32 %v383_v22, %v410_v56  ;;  %v418_v61 = vsub.f32 %v390_v25, %v417_v57 }
 0x5d0   :  { %v671_v62 = vsel %vm400_vm7, %v668_v47, %v670_v58  ;;  %v412_v63 = vsel %vm400_vm7, %v409_v49, %v411_v60  ;;  %v678_v2 = vsel %vm400_vm7, %v675_v48, %v677_v59  ;;  %v419_v3 = vsel %vm400_vm7, %v416_v43, %v418_v61 }
 0x5d1   :  { %1631 = vrcp.f32 %v671_v62 }
 0x5d2   :  { %1633 = vrcp.f32 %v412_v63 }
 0x5db   :  { %v1632_v4 = vpop.eup %1631 }
 0x5dc   :  { %v1634_v5 = vpop.eup %1633  ;;  %683 = vperm.xlu0 %1591, %v1632_v4  }
 0x5dd   :  { %424 = vperm.xlu1 %1592, %v1634_v5  }
 0x5e0   :  { %1593 = vset.pattern.permute.xlu0 %v1682_v6 }
 0x5e1   :  { %432 = vperm.xlu1 %1592, %v412_v63  }
 0x5e5   :  { %690 = vperm.xlu1 %1592, %v671_v62  }
 0x5e9   :  { %1594 = vset.pattern.permute.xlu1 %v1682_v6 }
 0x65b   :  { %v684_v8 = vpop.permute.xlu0 %683 }
 0x65c   :  { %v687_v9 = vmul.f32 %v684_v8, %v678_v2  ;;  %v425_v10 = vpop.permute.xlu1 %424  ;;  %v686_v14 = vmul.f32 %v684_v8, %v671_v62  ;;  %v250_v8 = vsel %vm1764_vm2, %v1773_v54, 0.0 }
 0x65d   :  { %v427_v11 = vmul.f32 %v425_v10, %v412_v63  ;;  %v428_v12 = vmul.f32 %v425_v10, %v419_v3  ;;  %v513_v10 = vsel %vm1764_vm2, %v1771_v53, 0.0 }
 0x65e   :  { %v703_v13 = vrot.slane %v687_v9, %v437_v7  ;;  %v696_v22 = vrot.slane %v686_v14, %v437_v7  ;;  %v251_v9 = vsel %vm28_vm0, %v250_v8, 0.0 }
 0x65f   :  { %v438_v15 = vrot.slane %v427_v11, %v437_v7  ;;  %v445_v16 = vrot.slane %v428_v12, %v437_v7  ;;  %v252_v11 = vrot.slane %v251_v9, 4  ;;  %v514_v12 = vsel %vm28_vm0, %v513_v10, 0.0 }
 0x660   :  { %v433_v17 = vpop.permute.xlu1 %432  ;;  %v515_v14 = vrot.slane %v514_v12, 4 }
 0x661   :  { %v439_v18 = vmul.f32 %v438_v15, %v433_v17  ;;  %v446_v19 = vmul.f32 %v445_v16, %v433_v17 }
 0x663   :  { %v440_v20 = vsub.f32 %v412_v63, %v439_v18  ;;  %v447_v21 = vsub.f32 %v419_v3, %v446_v19 }
 0x664   :  { %v691_v23 = vpop.permute.xlu1 %690 }
 0x665   :  { %v441_v24 = vsel %vm429_vm8, %v438_v15, %v440_v20  ;;  %v697_v25 = vmul.f32 %v696_v22, %v691_v23  ;;  %v704_v26 = vmul.f32 %v703_v13, %v691_v23  ;;  %v448_v27 = vsel %vm429_vm8, %v445_v16, %v447_v21 }
 0x666   :  { %1635 = vrcp.f32 %v441_v24  ;;  %v516_v16 = vadd.f32 %v515_v14, %v514_v12 }
 0x667   :  { %v698_v28 = vsub.f32 %v671_v62, %v697_v25  ;;  %v705_v29 = vsub.f32 %v678_v2, %v704_v26 }
 0x668   :  { %v517_v18 = vrot.slane %v516_v16, 2 }
 0x669   :  { %v699_v31 = vsel %vm429_vm8, %v696_v22, %v698_v28  ;;  %v706_v32 = vsel %vm429_vm8, %v703_v13, %v705_v29  ;;  %v253_v13 = vadd.f32 %v252_v11, %v251_v9 }
 0x66a   :  { %1637 = vrcp.f32 %v699_v31  ;;  %v518_v22 = vadd.f32 %v517_v18, %v516_v16 }
 0x66b   :  { %v254_v15 = vrot.slane %v253_v13, 2 }
 0x66d   :  { %v255_v17 = vadd.f32 %v254_v15, %v253_v13 }
 0x66f   :  { %v256_v21 = vrot.slane %v255_v17, 1 }
 0x670   :  { %v1636_v33 = vpop.eup %1635 }
 0x671   :  { %453 = vperm.xlu0 %1593, %v1636_v33   ;;  %v257_v26 = vadd.f32 %v256_v21, %v255_v17  ;;  %v921_v17 = vld [vmem:[%s1966_s1 + $0x50] sm:$0x1] }
 0x672   :  { %v924_v18 = vmul.f32 2.0, %v921_v17 }
 0x674   :  { %v1638_v36 = vpop.eup %1637 }
 0x675   :  { %718 = vperm.xlu0 %1593, %v699_v31   ;;  %711 = vperm.xlu1 %1594, %v1638_v36   ;;  %v503_v36 = vsel %vm245_vm11, %v257_v26, 0.0  ;;  %v1186_v26 = vld [vmem:[%s1966_s1 + $0x60] sm:$0xff] }
 0x679   :  { %461 = vperm.xlu1 %1594, %v441_v24   ;;  %1595 = vset.pattern.permute.xlu0 %v1683_v37 }
 0x67d   :  { %1596 = vset.pattern.permute.xlu1 %v1683_v37 }
 0x6f0   :  { %v454_v41 = vpop.permute.xlu0 %453 }
 0x6f1   :  { %v457_v43 = vmul.f32 %v454_v41, %v448_v27  ;;  %v456_v44 = vmul.f32 %v454_v41, %v441_v24 }
 0x6f3   :  { %v474_v45 = vrot.slane %v457_v43, %v466_v38  ;;  %v467_v51 = vrot.slane %v456_v44, %v466_v38 }
 0x6f4   :  { %v712_v46 = vpop.permute.xlu1 %711  ;;  %v719_v52 = vpop.permute.xlu0 %718 }
 0x6f5   :  { %v714_v47 = vmul.f32 %v712_v46, %v699_v31  ;;  %v715_v48 = vmul.f32 %v712_v46, %v706_v32 }
 0x6f7   :  { %v724_v49 = vrot.slane %v714_v47, %v466_v38  ;;  %v731_v50 = vrot.slane %v715_v48, %v466_v38 }
 0x6f8   :  { %v462_v55 = vpop.permute.xlu1 %461 }
 0x6f9   :  { %v725_v56 = vmul.f32 %v724_v49, %v719_v52  ;;  %v732_v57 = vmul.f32 %v731_v50, %v719_v52  ;;  %v468_v58 = vmul.f32 %v467_v51, %v462_v55  ;;  %v475_v59 = vmul.f32 %v474_v45, %v462_v55 }
 0x6fb   :  { %v726_v60 = vsub.f32 %v699_v31, %v725_v56  ;;  %v733_v61 = vsub.f32 %v706_v32, %v732_v57  ;;  %v469_v62 = vsub.f32 %v441_v24, %v468_v58  ;;  %v476_v63 = vsub.f32 %v448_v27, %v475_v59 }
 0x6fc   :  { %v519_v27 = vrot.slane %v518_v22, 1 }
 0x6fd   :  { %v727_v2 = vsel %vm458_vm9, %v724_v49, %v726_v60  ;;  %v470_v3 = vsel %vm458_vm9, %v467_v51, %v469_v62  ;;  %v734_v4 = vsel %vm458_vm9, %v731_v50, %v733_v61  ;;  %v477_v5 = vsel %vm458_vm9, %v474_v45, %v476_v63  ;;  %v918_v62 = vld [vmem:[%s1966_s1 + $0x38] sm:$0xff] }
 0x6fe   :  { %1639 = vrcp.f32 %v727_v2  ;;  %v520_v37 = vadd.f32 %v519_v27, %v518_v22  ;;  %v1537_v63 = vpack.c.bf16 %v918_v62, %v917_v40  ;;  %v1187_v27 = vld [vmem:[%s1966_s1 + $0x68] sm:$0xff] }
 0x6ff   :  { %1641 = vrcp.f32 %v470_v3 }
 0x700   :  { %v759_v46 = vsel %vm245_vm11, %v520_v37, 0.0  ;;  %1538 = vmatprep.subr.bf16.mxu0 %v1537_v63 }
 0x708   :  { %v1640_v6 = vpop.eup %1639 }
 0x709   :  { %v1642_v7 = vpop.eup %1641  ;;  %739 = vperm.xlu0 %1595, %v1640_v6  }
 0x70a   :  { %482 = vperm.xlu1 %1596, %v1642_v7  }
 0x70d   :  { %1598 = vset.pattern.permute.xlu0 %v1675_v34 }
 0x70e   :  { %489 = vperm.xlu1 %1596, %v470_v3   ;;  %v920_v3 = vld [vmem:[%s1966_s1 + $0x48] sm:$0xff] }
 0x712   :  { %745 = vperm.xlu1 %1596, %v727_v2   ;;  %v919_v2 = vld [vmem:[%s1966_s1 + $0x40] sm:$0xff] }
 0x716   :  { %1597 = vset.pattern.permute.xlu1 %v1675_v34  ;;  %v494_v34 = vsub.s32 7, %v1758_v39 }
 0x788   :  { %v740_v19 = vpop.permute.xlu0 %739 }
 0x789   :  { %v483_v20 = vpop.permute.xlu1 %482  ;;  %v742_v23 = vmul.f32 %v740_v19, %v734_v4 }
 0x78a   :  { %v485_v54 = vmul.f32 %v483_v20, %v477_v5 }
 0x78b   :  { %v751_v29 = vrot.slane %v742_v23, %v494_v34 }
 0x78c   :  { %v495_v24 = vrot.slane %v485_v54, %v494_v34  ;;  %v928_v34 = vrot.slane %v924_v18, %v1799_v30 }
 0x78d   :  { %v490_v25 = vpop.permute.xlu1 %489 }
 0x78e   :  { %v496_v53 = vmul.f32 %v495_v24, %v490_v25 }
 0x790   :  { %v497_v28 = vsub.f32 %v477_v5, %v496_v53  ;;  %v1185_v53 = vld [vmem:[%s1966_s1 + $0x58] sm:$0xff] }
 0x791   :  { %v746_v31 = vpop.permute.xlu1 %745 }
 0x792   :  { %v752_v32 = vmul.f32 %v751_v29, %v746_v31  ;;  %v498_v33 = vsel %vm486_vm10, %v495_v24, %v497_v28  ;;  %v1545_v28 = vpack.c.bf16 %v1186_v26, %v1185_v53  ;;  %v1189_v31 = vld [vmem:[%s1966_s1 + $0x78] sm:$0xff] }
 0x793   :  { %v499_v38 = vsel %vm1764_vm2, %v498_v33, 0.0  ;;  %v506_v41 = vmul.f32 %v503_v36, %v498_v33 }
 0x794   :  { %v753_v43 = vsub.f32 %v734_v4, %v752_v32  ;;  %v500_v44 = vsel %vm28_vm0, %v499_v38, 0.0  ;;  %v1541_v4 = vpack.c.bf16 %v920_v3, %v919_v2  ;;  %v1190_v32 = vld [vmem:[%s1966_s1 + $0x80] sm:$0xff] }
 0x795   :  { %501 = vadd.xlane.f32.xlu0 %v500_v44  ;;  %v507_v52 = vsel %vm248_vm14, %v506_v41, 0.0  ;;  %v1553_v33 = vpack.c.bf16 %v1190_v32, %v1189_v31 }
 0x796   :  { %v754_v45 = vsel %vm486_vm10, %v751_v29, %v753_v43 }
 0x797   :  { %v755_v47 = vsel %vm1764_vm2, %v754_v45, 0.0  ;;  %v762_v48 = vmul.f32 %v759_v46, %v754_v45 }
 0x798   :  { %v756_v49 = vsel %vm28_vm0, %v755_v47, 0.0 }
 0x799   :  { %757 = vadd.xlane.f32.xlu1 %v756_v49  ;;  %v763_v59 = vsel %vm248_vm14, %v762_v48, 0.0 }
 0x822   :  { %v502_v50 = vpop.xlane.xlu0 %501 }
 0x823   :  { %v504_v51 = vmul.f32 %v503_v36, %v502_v50 }
 0x825   :  { %v505_v42 = vsel %vm247_vm13, %v504_v51, 0.0  ;;  %v1648_v51 = vld [vmem:[%s1965_s0 + $0x8] sm:$0xff] }
 0x826   :  { %v508_v55 = vsub.f32 %v505_v42, %v507_v52  ;;  %v758_v56 = vpop.xlane.xlu1 %757 }
 0x827   :  { %v760_v57 = vmul.f32 %v759_v46, %v758_v56  ;;  %v1647_v46 = vld [vmem:[%s1965_s0] sm:$0xff]  ;;  %v1297_v56 = vld [vmem:[%s1966_s1 + $0x90] sm:$0xff] }
 0x828   :  { %1475 = vmatmul.mubr.msk.f32.vlgmr.msra.gmra.mrb[2].mxu0 %vm28_vm0, %v508_v55  ;;  %v509_v58 = vsel %vm28_vm0, %v508_v55, 0.0 }
 0x829   :  { %v761_v60 = vsel %vm247_vm13, %v760_v57, 0.0  ;;  %510 = vadd.xlane.f32.xlu0 %v509_v58  ;;  %1540 = vmatpush3.bf16.msra.mxu0 %v1537_v63  ;;  %v1298_v57 = vld [vmem:[%s1966_s1 + $0x98] sm:$0xff] }
 0x82a   :  { %v764_v61 = vsub.f32 %v761_v60, %v763_v59  ;;  %1542 = vmatprep.subr.bf16.mxu0 %v1541_v4  ;;  %v1557_v58 = vpack.c.bf16 %v1298_v57, %v1297_v56  ;;  %v1191_v59 = vld [vmem:[%s1966_s1 + $0x88] sm:$0x1] }
 0x82b   :  { %v1194_v60 = vmul.f32 2.0, %v1191_v59 }
 0x82c   :  { %1480 = vmatmul.mubr.msk.f32.vlgmr.msra.gmra.mrb[2].mxu1 %vm28_vm0, %v764_v61  ;;  %v765_v39 = vsel %vm28_vm0, %v764_v61, 0.0 }
 0x82d   :  { %766 = vadd.xlane.f32.xlu0 %v765_v39  ;;  %1495 = vmatprep.mubr.msk.f32.mxu1 %vm1684_vm12, %v1676_v35  ;;  %v1300_v39 = vld [vmem:[%s1966_s1 + $0xa8] sm:$0xff]  ;;  %v1198_v62 = vrot.slane %v1194_v60, %v1799_v30 }
 0x82e   :  { %1544 = vmatpush3.bf16.msra.mxu0 %v1541_v4 }
 0x82f   :  { %1546 = vmatprep.subr.bf16.mxu0 %v1545_v28 }
 0x8b6   :  { %v511_v5 = vpop.xlane.xlu0 %510 }
 0x8b7   :  { %v512_v6 = vadd.f32 1.0, %v511_v5 }
 0x8b9   :  { %1643 = vrcp.f32 %v512_v6 }
 0x8ba   :  { %v767_v7 = vpop.xlane.xlu0 %766 }
 0x8bb   :  { %v768_v8 = vadd.f32 1.0, %v767_v7 }
 0x8bd   :  { %1645 = vrcp.f32 %v768_v8 }
 0x8c3   :  { %v1644_v9 = vpop.eup %1643 }
 0x8c4   :  { %1013 = vperm.xlu1 %1597, %v1644_v9  }
 0x8c7   :  { %v1646_v10 = vpop.eup %1645 }
 0x8c8   :  { %1018 = vperm.xlu0 %1598, %v1646_v10  }
 0x8fb   :  { %v840_v11 = vpop.f32.mrb[2].mxu0 }
 0x8fc   :  { %v922_v12 = vadd.f32 %v840_v11, %v1713_v1  ;;  %v1476_v13 = vpop.f32.mrb[3].mxu0 }
 0x8fe   :  { %1490 = vmatprep.mubr.msk.f32.mxu0 %vm929_vm15, %v922_v12 }
 0x8ff   :  { %v913_v14 = vpop.f32.mrb[2].mxu1 }
 0x900   :  { %v923_v15 = vadd.f32 %v913_v14, %v1708_v0  ;;  %v1481_v16 = vpop.f32.mrb[3].mxu1 }
 0x902   :  { %1491 = vmatmul.mubr.msk.f32.vlgmr.msra.gmra.mrb[4].mxu0 %vm929_vm15, %v923_v15 }
 0x903   :  { %1548 = vmatpush3.bf16.msra.mxu0 %v1545_v28 }
 0x943   :  { %v1879_v22 = vpop.permute.xlu1 %1013 }
 0x947   :  { %v1877_v1 = vpop.permute.xlu0 %1018 }
 0x9d5   :  { %v1492_v19 = vpop.f32.mrb[4].mxu0 }
 0x9d6   :  { %v1008_v20 = vadd.f32 %v1492_v19, %v928_v34  ;;  %v1002_v54 = vpop.f32.mrb[5].mxu0 }
 0x9d7   :  { %v1003_v21 = vadd.f32 %v1002_v54, %v928_v34 }
 0x9d8   :  { %v1022_v0 = vmul.f32 %v1877_v1, %v1008_v20 }
 0x9d9   :  { %v1021_v23 = vmul.f32 %v1879_v22, %v1003_v21 }
 0x9da   :  { %v1883_v24 = vmax.f32 %v1022_v0, 0.0 }
 0x9db   :  { %v1885_v25 = vmax.f32 %v1021_v23, 0.0 }
 0x9dc   :  { %1029 = vrot.lane.b32.xlu1 %v1883_v24, %s1685_s9 }
 0x9dd   :  { %1494 = vmatpush3.msra.mxu1 %v1885_v25 }
 0x9de   :  { %1496 = vmatmul.mubr.msk.f32.vlgmr.msra.gmra.mrb[4].mxu1 %vm28_vm0, %v508_v55  ;;  %1498 = vmatprep.subr.mxu1 %v1676_v35 }
 0x9df   :  { %1499 = vmatpush3.msra.mxu1 %v1883_v24  ;;  %1500 = vmatprep.mubr.msk.f32.mxu1 %vm1684_vm12, %v1676_v35  ;;  %v1188_v35 = vld [vmem:[%s1966_s1 + $0x70] sm:$0xff] }
 0x9e0   :  { %1027 = vrot.lane.b32.xlu1 %v1885_v25, %s1685_s9  ;;  %v1549_v29 = vpack.c.bf16 %v1188_v35, %v1187_v27  ;;  %1558 = vmatprep.subr.bf16.mxu1 %v1557_v58 }
 0x9e2   :  { %1501 = vmatmul.mubr.msk.f32.vlgmr.msra.gmra.mrb[6].mxu1 %vm28_vm0, %v764_v61  ;;  %1550 = vmatprep.subr.bf16.mxu0 %v1549_v29  ;;  %vm1199_vm0 = vcmask 392192   ;;  %v1299_v61 = vld [vmem:[%s1966_s1 + $0xa0] sm:$0xff] }
 0x9e3   :  { %1552 = vmatpush3.bf16.msra.mxu0 %v1549_v29  ;;  %1560 = vmatpush3.bf16.msra.mxu1 %v1557_v58  ;;  %v1561_v40 = vpack.c.bf16 %v1300_v39, %v1299_v61 }
 0x9e4   :  { %1554 = vmatprep.subr.bf16.mxu0 %v1553_v33 }
 0x9e5   :  { %1562 = vmatprep.subr.bf16.mxu1 %v1561_v40 }
 0x9e7   :  { %1556 = vmatpush3.bf16.msra.mxu0 %v1553_v33  ;;  %1564 = vmatpush3.bf16.msra.mxu1 %v1561_v40 }
 0xa4e   :  { %v1030_v43 = vpop.permute.xlu1 %1029 }
 0xa4f   :  { %v1034_v52 = vsel %vm929_vm15, %v1648_v51, %v1030_v43 }
 0xa52   :  { %v1028_v44 = vpop.permute.xlu1 %1027 }
 0xa53   :  { %v1033_v47 = vsel %vm929_vm15, %v1647_v46, %v1028_v44 }
 0xab1   :  { %v1101_v36 = vpop.f32.mrb[4].mxu1 }
 0xab2   :  { %1177 = vrot.lane.b32.xlu1 %v1101_v36, %s1685_s9  ;;  %v1497_v37 = vpop.f32.mrb[5].mxu1 }
 0xab5   :  { %v1171_v38 = vpop.f32.mrb[6].mxu1 }
 0xab6   :  { %1179 = vrot.lane.b32.xlu1 %v1171_v38, %s1685_s9  ;;  %v1502_v41 = vpop.f32.mrb[7].mxu1 }
 0xb24   :  { %v1178_v45 = vpop.permute.xlu1 %1177 }
 0xb25   :  { %v1183_v48 = vsel %vm929_vm15, %v840_v11, %v1178_v45 }
 0xb26   :  { %v1192_v49 = vadd.f32 %v1183_v48, %v1033_v47 }
 0xb28   :  { %1515 = vmatprep.mubr.msk.f32.mxu0 %vm1199_vm0, %v1192_v49  ;;  %v1180_v50 = vpop.permute.xlu1 %1179 }
 0xb29   :  { %v1184_v42 = vsel %vm929_vm15, %v913_v14, %v1180_v50  ;;  %v1419_v14 = vld [vmem:[%s1966_s1 + $0xb0] ss:$0 sm:$0xff] }
 0xb2a   :  { %v1193_v55 = vadd.f32 %v1184_v42, %v1034_v52 }
 0xb2c   :  { %1516 = vmatmul.mubr.msk.f32.vlgmr.msra.gmra.mrb[6].mxu0 %vm1199_vm0, %v1193_v55 }
 0xbff   :  { %v1517_v63 = vpop.f32.mrb[6].mxu0 }
 0xc00   :  { %v1272_v2 = vpop.f32.mrb[7].mxu0  ;;  %v1278_v3 = vadd.f32 %v1517_v63, %v1198_v62 }
 0xc01   :  { %v1273_v4 = vadd.f32 %v1272_v2, %v1198_v62 }
 0xc02   :  { %v1282_v6 = vmul.f32 %v1278_v3, %v1877_v1 }
 0xc03   :  { %v1281_v5 = vmul.f32 %v1273_v4, %v1879_v22 }
 0xc04   :  { %v1284_v8 = vmax.f32 %v1282_v6, 0.0 }
 0xc05   :  { %v1283_v7 = vmax.f32 %v1281_v5, 0.0 }
 0xc07   :  { %1287 = vrot.lane.b32.xlu1 %v1283_v7, %s1686_s7 }
 0xc0b   :  { %1289 = vrot.lane.b32.xlu1 %v1284_v8, %s1686_s7 }
 0xc79   :  { %v1288_v9 = vpop.permute.xlu1 %1287 }
 0xc7a   :  { %v1293_v10 = vsel %vm41_vm1, %v1885_v25, %v1288_v9 }
 0xc7b   :  { %v1295_v30 = vadd.f32 %v1647_v46, %v1293_v10 }
 0xc7d   :  { %1526 = vmatprep.mubr.msk.f32.mxu1 %vm929_vm15, %v1295_v30  ;;  %v1290_v11 = vpop.permute.xlu1 %1289 }
 0xc7e   :  { %v1294_v12 = vsel %vm41_vm1, %v1883_v24, %v1290_v11 }
 0xc7f   :  { %v1296_v13 = vadd.f32 %v1648_v51, %v1294_v12 }
 0xc81   :  { %1527 = vmatmul.mubr.msk.f32.vlgmr.msra.gmra.mrb[8].mxu1 %vm929_vm15, %v1296_v13 }
 0xd54   :  { %v1528_v15 = vpop.f32.mrb[8].mxu1 }
 0xd55   :  { %v1384_v16 = vadd.f32 %v1528_v15, %v1419_v14  ;;  %v1378_v17 = vpop.f32.mrb[9].mxu1 }
 0xd56   :  { %v1379_v18 = vadd.f32 %v1419_v14, %v1378_v17 }
 0xd57   :  { %1388 = vst.msk [vmem:[#allocation2 + $0x8] sm:$0xff] %vm929_vm15, %v1384_v16 }
 0xd58   :  { %1387 = vst.msk [vmem:[#allocation2] sm:$0xff] %vm929_vm15, %v1379_v18 }
 0xd59   :  { %1660 = shalt.err (!%p1657_p4)
}
 0xd5a   :  { %s1661_s14 = scalar_lea.hbm %s1967_s2, 256 }
 0xd5b   :  { %p1662_p5 = scmp.ne.s32.totalorder %s1967_s2, %s1661_s14  ;;  %p1665_p6 = scmp.lt.u32.totalorder %s1661_s14, %s1967_s2 }
 0xd5d   :  { %p1667_p7 = pnand %p1665_p6, %p1662_p5 }
 0xd5f   :  { %1670 = shalt.err (!%p1667_p7)
}
 0xd60   :  { %s1688_s19 = smov 128   ;;  %s1689_s20 = smov 8  }
 0xd61   :  { %1400 = dma.vmem_to_hbm [thread:$0]  %s1395_s11, 256, %s1967_s2, [#allocation3], %s1688_s19, %s1688_s19, %s1689_s20  }
 0xd62   :  { %1671 = dma.done.wait [#allocation3], 256  }
 0xd63   :  { %1672 = vsyncadd [#allocation3], 4294967040 }
 0xd64   :  { %1404 = vsyncpa [#allocation3], 1 }

</bundles_post_ra>
